<compile_context>
chip_gen: v6e
topology: v6e:2x2x1
jax: 0.10.0
libtpu: 0.0.40
codegen_flags: <defaults>
</compile_context>

<pallas_src>
import functools

import jax
import jax.numpy as jnp
import numpy as np
from jax import lax
from jax.experimental import pallas as pl
from jax.experimental.pallas import tpu as pltpu


def _round_up(x, m):
    return (x + m - 1) // m * m


def _tile_bytes(shape, dtype):
    """VMEM bytes of one (8,128)-style tile, dtype-aware (bf16 packs 16 sublanes)."""
    shape = tuple(int(d) for d in shape)
    if len(shape) == 1:
        shape = (1,) + shape
    itemsize = int(np.dtype(dtype).itemsize)
    sublane = 8 * max(1, 4 // itemsize)
    lead = 1
    for d in shape[:-2]:
        lead *= d
    return lead * _round_up(shape[-2], sublane) * _round_up(shape[-1], 128) * itemsize


def _vmem_capacity_bytes():
    try:
        info = pltpu.get_tpu_info()
        cap = getattr(info, "vmem_capacity_bytes", None)
        if cap:
            return int(cap)
    except Exception:
        pass
    return 64 * 1024 * 1024   # conservative (v7x-sized) fallback


def _make_kernel(KQ, use_im2col):
    def conv_bn_act_kernel(x_ref, w_ref, scale_ref, shift_ref, o_ref):
        # x_ref:     (TWIN, WB, SSC)   bf16 space-to-depth row window (TWIN = TH+KQ-1)
        # w_ref:     (KQ*KQ*SSC, TCO)  bf16 rearranged conv weights (zero-padded taps)
        # scale_ref: (1, TCO)          f32 BN scale  (gamma * rsqrt(var+eps))
        # shift_ref: (1, TCO)          f32 BN shift  (beta - mean*scale)
        # o_ref:     (TH, WO, TCO)     bf16 output tile
        TH, WO, _ = o_ref.shape
        SSC = x_ref.shape[-1]

        if use_im2col:
            # Small per-tap contraction: build patches once, one MXU matmul with
            # contraction dim KQ*KQ*SSC.
            taps = [x_ref[pl.ds(qh, TH), pl.ds(qw, WO), :]
                    for qh in range(KQ) for qw in range(KQ)]
            patches = taps[0] if len(taps) == 1 else jnp.concatenate(taps, axis=-1)
            acc = jnp.einsum("hwc,co->hwo", patches, w_ref[...],
                             preferred_element_type=jnp.float32)
        else:
            # Channels already wide (>=256): accumulate per-tap matmuls, no patches
            # temporary, no lane-axis concatenate.
            acc = jnp.zeros(o_ref.shape, jnp.float32)
            for qh in range(KQ):
                for qw in range(KQ):
                    tap = x_ref[pl.ds(qh, TH), pl.ds(qw, WO), :]
                    wt = w_ref[pl.ds((qh * KQ + qw) * SSC, SSC), :]
                    acc = acc + jnp.einsum("hwc,co->hwo", tap, wt,
                                           preferred_element_type=jnp.float32)

        # f32 epilogue: BN scale/shift + ReLU, then bf16 store.
        y = jnp.maximum(acc * scale_ref[...] + shift_ref[...], 0.0)
        o_ref[...] = y.astype(o_ref.dtype)

    return conv_bn_act_kernel


@functools.partial(jax.jit, static_argnames=("kernel_size", "stride"))
def conv_bn_act(x_nchw, weight_hwio, bn_gamma, bn_beta, bn_mean, bn_var,
                *, kernel_size, stride=1, eps=1e-5):
    """Forward pass of ConvBnAct.  x_nchw: (N, Cin, H, W) float32 -> (N, Cout, HO, WO) f32."""
    N, CIN, H, W = x_nchw.shape
    K = int(kernel_size)
    S = int(stride)
    P = K // 2
    COUT = weight_hwio.shape[-1]
    HO = (H + 2 * P - K) // S + 1
    WO = (W + 2 * P - K) // S + 1

    out_dtype = jnp.bfloat16

    # ---- Effective (space-to-depth) conv geometry: stride-1 conv with kernel KQ over
    #      SSC = S*S*CIN channels; weights zero-padded for taps outside the original K.
    KQ = -(-K // S)                 # ceil(K / S)
    SSC = S * S * CIN
    KKC = KQ * KQ * SSC             # contraction dim of the effective conv
    WB = WO + KQ - 1                # window width in s2d columns

    # ---- COUT blocking: no padding below 128 (avoids small-COUT write amplification);
    #      lane-dense multiple of the block above 128.
    if COUT <= 128:
        COUT_P = COUT
        TCO = COUT
    else:
        COUT_P = _round_up(COUT, 128)
        TCO = 256 if COUT_P % 256 == 0 else 128
    num_co = COUT_P // TCO

    # ---- BatchNorm (eval): f32 scale/shift applied in the kernel epilogue.
    scale = bn_gamma * lax.rsqrt(bn_var + eps)            # (COUT,)
    shift = bn_beta - bn_mean * scale                     # (COUT,)
    scale_p = jnp.pad(scale, (0, COUT_P - COUT)).astype(jnp.float32)[None, :]
    shift_p = jnp.pad(shift, (0, COUT_P - COUT)).astype(jnp.float32)[None, :]

    # ---- Rearranged weights: (K,K,CIN,COUT) -> zero-pad K to KQ*S -> (KQ*KQ*SSC, COUT_P).
    #      Row order = tap (qh,qw) major, then channel (ph*S+pw)*CIN + c, matching x_s2d.
    Kpad = KQ * S
    wp = jnp.pad(weight_hwio, ((0, Kpad - K), (0, Kpad - K), (0, 0), (0, 0)))
    w_eff = (wp.reshape(KQ, S, KQ, S, CIN, COUT)
               .transpose(0, 2, 1, 3, 4, 5)
               .reshape(KKC, COUT))
    w_eff = jnp.pad(w_eff, ((0, 0), (0, COUT_P - COUT))).astype(jnp.bfloat16)

    use_im2col = (KQ == 1) or (SSC < 256)

    # ---- Derive TH (output rows per tile) from the VMEM budget. ----
    hw_vmem = _vmem_capacity_bytes()
    usable = int(hw_vmem * 0.85)
    budget = int(usable * 0.6)

    def _usage(th):
        twin = th + KQ - 1
        u = 2 * _tile_bytes((twin, WB, SSC), jnp.bfloat16)        # input window (dbl buf)
        u += 2 * _tile_bytes((th, WO, TCO), out_dtype)            # output tile  (dbl buf)
        u += 2 * _tile_bytes((KKC, TCO), jnp.bfloat16)            # weights      (dbl buf)
        u += 4 * _tile_bytes((1, TCO), jnp.float32)               # scale+shift  (dbl buf)
        u += _tile_bytes((th, WO, TCO), jnp.float32)              # f32 accumulator
        if use_im2col:
            u += _tile_bytes((th, WO, KKC), jnp.bfloat16)         # patches temporary
        else:
            u += _tile_bytes((th, WO, SSC), jnp.bfloat16)         # per-tap temporary
        return u

    TH = min(HO, max(8, pl.cdiv(2048, max(WO, 1))))
    while TH > 1 and _usage(TH) > budget:
        TH = max(1, TH // 2)
    num_ht = pl.cdiv(HO, TH)
    HO_pad = num_ht * TH
    TWIN = TH + KQ - 1

    vmem_limit = int(min(usable, max(32 * 1024 * 1024, 2 * _usage(TH))))

    # ---- Input prep: NCHW -> NHWC, bf16, spatial zero-pad, space-to-depth, and
    #      per-tile row windows (halo of KQ-1 rows) so the BlockSpec depends on t.
    HB = HO_pad + KQ - 1
    HP = max(_round_up(H + 2 * P, S), HB * S)
    WP = max(_round_up(W + 2 * P, S), WB * S)
    x_nhwc = jnp.transpose(x_nchw, (0, 2, 3, 1)).astype(jnp.bfloat16)
    x_pad = jnp.pad(x_nhwc, ((0, 0), (P, HP - H - P), (P, WP - W - P), (0, 0)))
    x_s2d = (x_pad.reshape(N, HP // S, S, WP // S, S, CIN)
                  .transpose(0, 1, 3, 2, 4, 5)
                  .reshape(N, HP // S, WP // S, SSC))
    x_s2d = x_s2d[:, :HB, :WB, :]
    row_ids = jnp.arange(num_ht)[:, None] * TH + jnp.arange(TWIN)[None, :]
    x_win = x_s2d[:, row_ids]                      # (N, num_ht, TWIN, WB, SSC)

    kernel = _make_kernel(KQ, use_im2col)

    flops = 2 * N * HO_pad * WO * KKC * COUT_P
    bytes_accessed = int(N * num_ht * TWIN * WB * SSC * 2
                         + KKC * COUT_P * 2 + 2 * COUT_P * 4
                         + N * HO_pad * WO * COUT_P * np.dtype(out_dtype).itemsize)

    out_padded = pl.pallas_call(
        kernel,
        out_shape=jax.ShapeDtypeStruct((N, HO_pad, WO, COUT_P), out_dtype),
        grid_spec=pltpu.PrefetchScalarGridSpec(
            num_scalar_prefetch=0,
            grid=(N, num_ht, num_co),
            in_specs=[
                # Per-tile row window: only changes with (n, t) -> stays resident across co.
                pl.BlockSpec((None, None, TWIN, WB, SSC),
                             lambda n, t, co: (n, t, 0, 0, 0)),
                pl.BlockSpec((KKC, TCO), lambda n, t, co: (0, co)),
                pl.BlockSpec((1, TCO), lambda n, t, co: (0, co)),
                pl.BlockSpec((1, TCO), lambda n, t, co: (0, co)),
            ],
            out_specs=pl.BlockSpec((None, TH, WO, TCO),
                                   lambda n, t, co: (n, t, 0, co)),
        ),
        compiler_params=pltpu.CompilerParams(
            dimension_semantics=("parallel", "parallel", "arbitrary"),
            vmem_limit_bytes=vmem_limit,
        ),
        cost_estimate=pl.CostEstimate(
            flops=flops, transcendentals=0, bytes_accessed=bytes_accessed),
    )(x_win, w_eff, scale_p, shift_p)

    # Strip row/COUT padding, NHWC -> NCHW, back to f32 (module output dtype).
    out_nhwc = out_padded[:, :HO, :, :COUT]
    return jnp.transpose(out_nhwc, (0, 3, 1, 2)).astype(jnp.float32)


def _reference(x_nchw, weight_hwio, gamma, beta, mean, var, *, stride, eps=1e-5):
    K = weight_hwio.shape[0]
    P = K // 2
    x_nhwc = jnp.transpose(x_nchw, (0, 2, 3, 1))
    y = lax.conv_general_dilated(
        x_nhwc, weight_hwio,
        window_strides=(stride, stride),
        padding=((P, P), (P, P)),
        dimension_numbers=("NHWC", "HWIO", "NHWC"),
    )
    scale = gamma * lax.rsqrt(var + eps)
    shift = beta - mean * scale
    y = jnp.maximum(y * scale + shift, 0.0)
    return jnp.transpose(y, (0, 3, 1, 2))


if __name__ == "__main__":
    # Small, deterministic configs: stem-like 3x3 (stride 1 and 2) and a 1x1
    # "conv_head"-like layer with COUT > 128 (exercises the COUT tiling axis).
    configs = [
        dict(N=2, CIN=4, H=16, W=16, COUT=8, K=3, S=1),
        dict(N=2, CIN=4, H=16, W=16, COUT=8, K=3, S=2),
        dict(N=2, CIN=8, H=8, W=8, COUT=320, K=1, S=1),
    ]

    root_key = jax.random.PRNGKey(0)
    for idx, cfg in enumerate(configs):
        N, CIN, H, W = cfg["N"], cfg["CIN"], cfg["H"], cfg["W"]
        COUT, K, S = cfg["COUT"], cfg["K"], cfg["S"]

        key = jax.random.fold_in(root_key, idx)
        kx, kw, kg, kb, km, kv = jax.random.split(key, 6)

        x = jax.random.normal(kx, (N, CIN, H, W), jnp.float32)

        # Conv weight (PyTorch shape (COUT, CIN, K, K)) -> HWIO for the kernel.
        fan_in = CIN * K * K
        w_oihw = jax.random.uniform(
            kw, (COUT, CIN, K, K), jnp.float32,
            minval=-1.0 / np.sqrt(fan_in), maxval=1.0 / np.sqrt(fan_in))
        w_hwio = jnp.transpose(w_oihw, (2, 3, 1, 0))

        # BatchNorm parameters (eval-mode running stats; deterministic).
        gamma = 1.0 + 0.1 * jax.random.normal(kg, (COUT,), jnp.float32)
        beta = 0.1 * jax.random.normal(kb, (COUT,), jnp.float32)
        running_mean = 0.1 * jax.random.normal(km, (COUT,), jnp.float32)
        running_var = 1.0 + 0.1 * jax.random.uniform(kv, (COUT,), jnp.float32)

        out = conv_bn_act(x, w_hwio, gamma, beta, running_mean, running_var,
                          kernel_size=K, stride=S)
        out = jax.block_until_ready(out)

        ref = _reference(x, w_hwio, gamma, beta, running_mean, running_var, stride=S)

        # bf16 matmul inputs + bf16 output store; accumulation and BN epilogue are f32.
        np.testing.assert_allclose(np.asarray(out), np.asarray(ref),
                                   rtol=2e-2, atol=2e-2)

        P = K // 2
        HO = (H + 2 * P - K) // S + 1
        WO = (W + 2 * P - K) // S + 1
        assert out.shape == (N, COUT, HO, WO)

    print("KERNEL_OK")
</pallas_src>

<mosaic_0001>
module attributes {stable_mosaic.version = 11 : i64} {
  func.func @conv_bn_act_kernel(%arg0: i32, %arg1: i32, %arg2: i32, %arg3: memref<1x1x18x18x4xbf16, #tpu.memory_space<vmem>>, %arg4: memref<36x8xbf16, #tpu.memory_space<vmem>>, %arg5: memref<1x8xf32, #tpu.memory_space<vmem>>, %arg6: memref<1x8xf32, #tpu.memory_space<vmem>>, %arg7: memref<1x16x16x8xbf16, #tpu.memory_space<vmem>>) attributes {dimension_semantics = [#tpu.dimension_semantics<parallel>, #tpu.dimension_semantics<parallel>, #tpu.dimension_semantics<arbitrary>], iteration_bounds = array<i64: 2, 1, 1>, scalar_prefetch = 0 : i64, scratch_operands = 0 : i64, tpu.core_type = #tpu.core_type<tc>, window_params = [{transform_indices = @transform_0, window_bounds = array<i64: 1, 1, 18, 18, 4>}, {transform_indices = @transform_1, window_bounds = array<i64: 36, 8>}, {transform_indices = @transform_2, window_bounds = array<i64: 1, 8>}, {transform_indices = @transform_3, window_bounds = array<i64: 1, 8>}, {transform_indices = @transform_4, window_bounds = array<i64: 1, 16, 16, 8>}]} {
    %c0 = arith.constant 0 : index
    %c0_0 = arith.constant 0 : index
    %c0_1 = arith.constant 0 : index
    %c0_2 = arith.constant 0 : index
    %c0_3 = arith.constant 0 : index
    %0 = vector.load %arg3[%c0, %c0_0, %c0_1, %c0_2, %c0_3] : memref<1x1x18x18x4xbf16, #tpu.memory_space<vmem>>, vector<1x1x16x16x4xbf16>
    %1 = vector.shape_cast %0 : vector<1x1x16x16x4xbf16> to vector<16x16x4xbf16>
    %c0_4 = arith.constant 0 : index
    %c0_5 = arith.constant 0 : index
    %c0_6 = arith.constant 0 : index
    %c1 = arith.constant 1 : index
    %c0_7 = arith.constant 0 : index
    %2 = vector.load %arg3[%c0_4, %c0_5, %c0_6, %c1, %c0_7] : memref<1x1x18x18x4xbf16, #tpu.memory_space<vmem>>, vector<1x1x16x16x4xbf16>
    %3 = vector.shape_cast %2 : vector<1x1x16x16x4xbf16> to vector<16x16x4xbf16>
    %c0_8 = arith.constant 0 : index
    %c0_9 = arith.constant 0 : index
    %c0_10 = arith.constant 0 : index
    %c2 = arith.constant 2 : index
    %c0_11 = arith.constant 0 : index
    %4 = vector.load %arg3[%c0_8, %c0_9, %c0_10, %c2, %c0_11] : memref<1x1x18x18x4xbf16, #tpu.memory_space<vmem>>, vector<1x1x16x16x4xbf16>
    %5 = vector.shape_cast %4 : vector<1x1x16x16x4xbf16> to vector<16x16x4xbf16>
    %c0_12 = arith.constant 0 : index
    %c0_13 = arith.constant 0 : index
    %c1_14 = arith.constant 1 : index
    %c0_15 = arith.constant 0 : index
    %c0_16 = arith.constant 0 : index
    %6 = vector.load %arg3[%c0_12, %c0_13, %c1_14, %c0_15, %c0_16] : memref<1x1x18x18x4xbf16, #tpu.memory_space<vmem>>, vector<1x1x16x16x4xbf16>
    %7 = vector.shape_cast %6 : vector<1x1x16x16x4xbf16> to vector<16x16x4xbf16>
    %c0_17 = arith.constant 0 : index
    %c0_18 = arith.constant 0 : index
    %c1_19 = arith.constant 1 : index
    %c1_20 = arith.constant 1 : index
    %c0_21 = arith.constant 0 : index
    %8 = vector.load %arg3[%c0_17, %c0_18, %c1_19, %c1_20, %c0_21] : memref<1x1x18x18x4xbf16, #tpu.memory_space<vmem>>, vector<1x1x16x16x4xbf16>
    %9 = vector.shape_cast %8 : vector<1x1x16x16x4xbf16> to vector<16x16x4xbf16>
    %c0_22 = arith.constant 0 : index
    %c0_23 = arith.constant 0 : index
    %c1_24 = arith.constant 1 : index
    %c2_25 = arith.constant 2 : index
    %c0_26 = arith.constant 0 : index
    %10 = vector.load %arg3[%c0_22, %c0_23, %c1_24, %c2_25, %c0_26] : memref<1x1x18x18x4xbf16, #tpu.memory_space<vmem>>, vector<1x1x16x16x4xbf16>
    %11 = vector.shape_cast %10 : vector<1x1x16x16x4xbf16> to vector<16x16x4xbf16>
    %c0_27 = arith.constant 0 : index
    %c0_28 = arith.constant 0 : index
    %c2_29 = arith.constant 2 : index
    %c0_30 = arith.constant 0 : index
    %c0_31 = arith.constant 0 : index
    %12 = vector.load %arg3[%c0_27, %c0_28, %c2_29, %c0_30, %c0_31] : memref<1x1x18x18x4xbf16, #tpu.memory_space<vmem>>, vector<1x1x16x16x4xbf16>
    %13 = vector.shape_cast %12 : vector<1x1x16x16x4xbf16> to vector<16x16x4xbf16>
    %c0_32 = arith.constant 0 : index
    %c0_33 = arith.constant 0 : index
    %c2_34 = arith.constant 2 : index
    %c1_35 = arith.constant 1 : index
    %c0_36 = arith.constant 0 : index
    %14 = vector.load %arg3[%c0_32, %c0_33, %c2_34, %c1_35, %c0_36] : memref<1x1x18x18x4xbf16, #tpu.memory_space<vmem>>, vector<1x1x16x16x4xbf16>
    %15 = vector.shape_cast %14 : vector<1x1x16x16x4xbf16> to vector<16x16x4xbf16>
    %c0_37 = arith.constant 0 : index
    %c0_38 = arith.constant 0 : index
    %c2_39 = arith.constant 2 : index
    %c2_40 = arith.constant 2 : index
    %c0_41 = arith.constant 0 : index
    %16 = vector.load %arg3[%c0_37, %c0_38, %c2_39, %c2_40, %c0_41] : memref<1x1x18x18x4xbf16, #tpu.memory_space<vmem>>, vector<1x1x16x16x4xbf16>
    %17 = vector.shape_cast %16 : vector<1x1x16x16x4xbf16> to vector<16x16x4xbf16>
    %18 = tpu.concatenate %1, %3, %5, %7, %9, %11, %13, %15, %17 in 2 : vector<16x16x4xbf16>, vector<16x16x4xbf16>, vector<16x16x4xbf16>, vector<16x16x4xbf16>, vector<16x16x4xbf16>, vector<16x16x4xbf16>, vector<16x16x4xbf16>, vector<16x16x4xbf16>, vector<16x16x4xbf16> -> vector<16x16x36xbf16>
    %c0_42 = arith.constant 0 : index
    %c0_43 = arith.constant 0 : index
    %19 = vector.load %arg4[%c0_42, %c0_43] : memref<36x8xbf16, #tpu.memory_space<vmem>>, vector<36x8xbf16>
    "tpu.trace_start"() <{level = 10 : i32, message = "hwc,co->hwo"}> : () -> ()
    %cst = arith.constant dense<0.000000e+00> : vector<16x16x8xf32>
    %20 = tpu.matmul %18, %19, %cst {dimension_numbers = #tpu.dot_dimension_numbers<[2], [0], [0, 1], [1], [0, 0, 0, 1, 1, 1], [], []>} : vector<16x16x36xbf16>, vector<36x8xbf16>, vector<16x16x8xf32> -> vector<16x16x8xf32>
    "tpu.trace_stop"() : () -> ()
    %c0_44 = arith.constant 0 : index
    %c0_45 = arith.constant 0 : index
    %21 = vector.load %arg5[%c0_44, %c0_45] : memref<1x8xf32, #tpu.memory_space<vmem>>, vector<1x8xf32>
    %22 = vector.shape_cast %21 : vector<1x8xf32> to vector<1x1x8xf32>
    %23 = vector.broadcast %22 : vector<1x1x8xf32> to vector<16x16x8xf32>
    %24 = arith.mulf %20, %23 : vector<16x16x8xf32>
    %c0_46 = arith.constant 0 : index
    %c0_47 = arith.constant 0 : index
    %25 = vector.load %arg6[%c0_46, %c0_47] : memref<1x8xf32, #tpu.memory_space<vmem>>, vector<1x8xf32>
    %26 = vector.shape_cast %25 : vector<1x8xf32> to vector<1x1x8xf32>
    %27 = vector.broadcast %26 : vector<1x1x8xf32> to vector<16x16x8xf32>
    %28 = arith.addf %24, %27 : vector<16x16x8xf32>
    %cst_48 = arith.constant 0.000000e+00 : f32
    %29 = vector.broadcast %cst_48 : f32 to vector<16x16x8xf32>
    %30 = arith.maximumf %28, %29 : vector<16x16x8xf32>
    %31 = arith.truncf %30 : vector<16x16x8xf32> to vector<16x16x8xbf16>
    %c0_49 = arith.constant 0 : index
    %c0_50 = arith.constant 0 : index
    %c0_51 = arith.constant 0 : index
    %c0_52 = arith.constant 0 : index
    %32 = vector.load %arg7[%c0_49, %c0_50, %c0_51, %c0_52] : memref<1x16x16x8xbf16, #tpu.memory_space<vmem>>, vector<1x16x16x8xbf16>
    %33 = vector.shape_cast %32 : vector<1x16x16x8xbf16> to vector<16x16x8xbf16>
    %34 = vector.shape_cast %31 : vector<16x16x8xbf16> to vector<1x16x16x8xbf16>
    tpu.vector_store %arg7[%c0_49, %c0_50, %c0_51, %c0_52], %34 {strides = array<i32>} : memref<1x16x16x8xbf16, #tpu.memory_space<vmem>>, vector<1x16x16x8xbf16>,
    return
  }
  func.func @transform_0(%arg0: i32, %arg1: i32, %arg2: i32) -> (i32, i32, i32, i32, i32) {
    %c0_i32 = arith.constant 0 : i32
    %c0_i32_0 = arith.constant 0 : i32
    %c0_i32_1 = arith.constant 0 : i32
    %c0_i32_2 = arith.constant 0 : i32
    return %arg0, %arg1, %c0_i32, %c0_i32_0, %c0_i32_1 : i32, i32, i32, i32, i32
  }
  func.func @transform_1(%arg0: i32, %arg1: i32, %arg2: i32) -> (i32, i32) {
    %c0_i32 = arith.constant 0 : i32
    %c0_i32_0 = arith.constant 0 : i32
    return %c0_i32, %arg2 : i32, i32
  }
  func.func @transform_2(%arg0: i32, %arg1: i32, %arg2: i32) -> (i32, i32) {
    %c0_i32 = arith.constant 0 : i32
    %c0_i32_0 = arith.constant 0 : i32
    return %c0_i32, %arg2 : i32, i32
  }
  func.func @transform_3(%arg0: i32, %arg1: i32, %arg2: i32) -> (i32, i32) {
    %c0_i32 = arith.constant 0 : i32
    %c0_i32_0 = arith.constant 0 : i32
    return %c0_i32, %arg2 : i32, i32
  }
  func.func @transform_4(%arg0: i32, %arg1: i32, %arg2: i32) -> (i32, i32, i32, i32) {
    %c0_i32 = arith.constant 0 : i32
    %c0_i32_0 = arith.constant 0 : i32
    return %arg0, %arg1, %c0_i32, %arg2 : i32, i32, i32, i32
  }
}

</mosaic_0001>

<bundles_post_ra>
// kernel: conv_bn_act.1
= control target key start
LH: loop header
LB: loop body
LE: loop exit
PB: predicated region body
PF: predicated region fallthrough
CT: control target
= control target key end

     0   :  { %s3572_s15 = smov 0   ;;  %s3574_s16 = smov 0   ;;  %s4965_s0 = inlined_call_operand.vmem [shape: bf16[2,1,18,18,4], index: 0, kind: input, shape index: {}]   ;;  %s4966_s1 = inlined_call_operand.vmem [shape: bf16[36,8], index: 1, kind: input, shape index: {}]   ;;  %s4967_s2 = inlined_call_operand.vmem [shape: f32[1,8], index: 2, kind: input, shape index: {}]   ;;  %s4968_s3 = inlined_call_operand.vmem [shape: f32[1,8], index: 3, kind: input, shape index: {}]   ;;  %s4969_s4 = inlined_call_operand.vmem [shape: bf16[2,16,16,8], index: 4, kind: output, shape index: {}]  }
   0x1   :  { %s3576_s17 = smov 0  }
   0x2 LB: > { %s33_s18 = sadd.s32 1, %s3533_s16  ;;  %p2906_p0 = scmp.ge.s32.totalorder %s3537_s17, 1  ;;  %s3537_s17 = sphi %s3576_s17, %s14_s17   ;;  %s3533_s16 = sphi %s3574_s16, %s4986_s16   ;;  %s3529_s15 = sphi %s3572_s15, %s4985_s15  }
   0x3   : > { %p35_p1 = scmp.ge.s32.totalorder %s33_s18, 2  ;;  %p216_p2 = scmp.lt.s32.totalorder %s3537_s17, 3 }
   0x5   : > { %s4988_s18 = smov (%p35_p1, %s33_s18), 0  ;;  %p217_p3 = pnand %p2906_p0, %p216_p2 }
   0x7   : > { %220 = sbr.rel (%p217_p3) target bundleno = 600 (0x258), region = 36 }
   0xc   : > { %p264_p4 = scmp.lt.s32.totalorder %s3529_s15, 1  ;;  %s3539_s23 = smov 12   ;;  %vm893_vm0 = vcmask 1046528   ;;  %vm620_vm1 = vsmask.f32 7424  ;;  %vm2315_vm2 = vcmask 1041408  }
   0xd   : > { %s3540_s24 = smov 8   ;;  %s3541_s25 = smov 4   ;;  %vm1998_vm3 = vcmask 31744   ;;  %vm2031_vm4 = vcmask 64512   ;;  %vm2064_vm5 = vcmask 97280   ;;  %vm2097_vm6 = vcmask 130048  }
   0xe   : > { %s4990_s15 = smov (!%p264_p4, %s3529_s15), 1  ;;  %s3542_s26 = smov 16   ;;  %vm2130_vm7 = vcmask 162816   ;;  %vm2163_vm8 = vcmask 195584   ;;  %vm2196_vm9 = vcmask 228352   ;;  %vm2229_vm10 = vcmask 261120  }
   0xf   : > { %s3335_s19 = smul.u32 216, %s4990_s15  ;;  %s3543_s27 = smov 20   ;;  %vm2282_vm11 = vcmask 293888   ;;  %vm2718_vm12 = vcmask 60416  }
  0x10   : > { %s3544_s28 = smov 24   ;;  %s3545_s29 = smov 28  }
  0x11   : > { %s3596_s22 = scalar_lea.vmem %s4965_s0, %s3335_s19  ;;  %s3546_s30 = smov 32  }
  0x12   : > { %v2926_v0 = vld [vmem:[%s3596_s22 + $0x6c] sm:$0xf]  ;;  %v3600_v1 = vld [vmem:[%s3596_s22 + $0x70] sm:$0xf]  ;;  %v315_v6 = vld [vmem:[%s3596_s22 + $0x64] sm:$0xf] }
  0x13   : > { %v3603_v2 = vcombine.low %v2926_v0, %v3600_v1  ;;  %v2910_v3 = vld [vmem:[%s3596_s22 + $0xc] sm:$0xf]  ;;  %v3607_v4 = vld [vmem:[%s3596_s22 + $0x10] sm:$0xf]  ;;  %v354_v7 = vld [vmem:[%s3596_s22 + $0x60] sm:$0xe] }
  0x14   : > { %v3610_v5 = vcombine.low %v2910_v3, %v3607_v4  ;;  %v3617_v8 = vld [vmem:[%s3596_s22 + $0x68] ss:$0 sps:$4 sm:$0x11]   ;;  %v3078_v9 = vcombine.low %v354_v7, %v315_v6  ;;  %v314_v10 = vld [vmem:[%s3596_s22 + $0x60] sm:$0xf]  ;;  %s3237_s19 = sshll.u32 %s4990_s15, 7 }
  0x15   : > { %1070 = vrot.lane.b32.xlu1 %v3603_v2, %s3539_s23  ;;  %v1233_v11 = vshll.u32 %v3603_v2, 16  ;;  %v299_v12 = vld [vmem:[%s3596_s22 + $0x4] sm:$0xf]  ;;  %v919_v14 = vrot.slane %v3617_v8, 1  ;;  %v346_v15 = vld [vmem:[%s3596_s22] sm:$0xe]  ;;  %v3628_v18 = vcombine.low %v314_v10, %v315_v6  ;;  %s4834_s15 = scalar_lea.vmem %s4969_s4, %s3237_s19 }
  0x16   : > { %1054 = vrot.lane.b32.xlu0 %v3610_v5, %s3539_s23  ;;  %v918_v13 = vrot.slane %v3078_v9, 1  ;;  %v298_v16 = vld [vmem:[%s3596_s22] sm:$0xf]  ;;  %v1137_v17 = vshll.u32 %v3610_v5, 16  ;;  %v3070_v20 = vcombine.low %v346_v15, %v299_v12  ;;  %v316_v21 = vld [vmem:[%s3596_s22 + $0x6c] sm:$0xf] }
  0x17   : > { %v3375_v19 = vld [vmem:[%s3596_s22 + $0x8] ss:$0 sps:$4 sm:$0x11]   ;;  %v3633_v23 = vcombine.low %v298_v16, %v299_v12  ;;  %v317_v24 = vld [vmem:[%s3596_s22 + $0x70] sm:$0xf]  ;;  %v718_v30 = vshrl.u32 %v3628_v18, 16 }
  0x18   : > { %v920_v22 = vsel %vm893_vm0, %v918_v13, %v919_v14  ;;  %v355_v25 = vld [vmem:[%s3596_s22 + $0x6c] sm:$0xe]  ;;  %v894_v26 = vrot.slane %v3070_v20, 1  ;;  %v895_v27 = vrot.slane %v3375_v19, 1  ;;  %v3640_v31 = vcombine.low %v316_v21, %v317_v24  ;;  %v301_v33 = vld [vmem:[%s3596_s22 + $0x10] sm:$0xf] }
  0x19   : > { %958 = vrot.lane.b32.xlu1 %v920_v22, %s3540_s24  ;;  %v3379_v28 = vld [vmem:[%s3596_s22 + $0x74] ss:$0 sps:$4 sm:$0x11]   ;;  %v3079_v29 = vcombine.low %v355_v25, %v317_v24  ;;  %v300_v32 = vld [vmem:[%s3596_s22 + $0xc] sm:$0xf]  ;;  %v622_v41 = vshrl.u32 %v3633_v23, 16 }
  0x1a   : > { %v896_v34 = vsel %vm893_vm0, %v894_v26, %v895_v27  ;;  %v922_v36 = vrot.slane %v3379_v28, 1  ;;  %v347_v37 = vld [vmem:[%s3596_s22 + $0xc] sm:$0xe]  ;;  %v3646_v38 = vcombine.low %v300_v32, %v301_v33  ;;  %v3382_v39 = vld [vmem:[%s3596_s22 + $0x14] ss:$0 sps:$4 sm:$0x11]  }
  0x1b   : > { %v921_v35 = vrot.slane %v3079_v29, 1  ;;  %942 = vrot.lane.b32.xlu0 %v896_v34, %s3540_s24  ;;  %v3071_v40 = vcombine.low %v347_v37, %v301_v33  ;;  %v624_v42 = vshll.u32 %v3633_v23, 16  ;;  %v629_v43 = vshll.u32 %v3375_v19, 16  ;;  %v2928_v52 = vld [vmem:[%s3596_s22 + $0x78] sm:$0xf] }
  0x1c   : > { %v634_v45 = vshrl.u32 %v3646_v38, 16  ;;  %v636_v46 = vshll.u32 %v3646_v38, 16  ;;  %v730_v47 = vshrl.u32 %v3640_v31, 16  ;;  %v898_v49 = vrot.slane %v3382_v39, 1  ;;  %v3660_v57 = vld [vmem:[%s3596_s22 + $0x7c] sm:$0xf] }
  0x1d   : > { %v923_v44 = vsel %vm893_vm0, %v921_v35, %v922_v36  ;;  %v897_v48 = vrot.slane %v3071_v40, 1  ;;  %v641_v50 = vshll.u32 %v3382_v39, 16  ;;  %v626_v51 = vrot.slane %v624_v42, 1  ;;  %v2912_v62 = vld [vmem:[%s3596_s22 + $0x18] sm:$0xf] }
  0x1e   : > { %960 = vrot.lane.b32.xlu1 %v923_v44, %s3540_s24  ;;  %v638_v53 = vrot.slane %v636_v46, 1  ;;  %v631_v54 = vrot.slane %v629_v43, 1  ;;  %v732_v55 = vshll.u32 %v3640_v31, 16  ;;  %v737_v56 = vshll.u32 %v3379_v28, 16  ;;  %v3666_v63 = vld [vmem:[%s3596_s22 + $0x1c] sm:$0xf] }
  0x1f   : > { %v899_v58 = vsel %vm893_vm0, %v897_v48, %v898_v49  ;;  %v643_v59 = vrot.slane %v641_v50, 1  ;;  %v627_v60 = vor.u32 %v626_v51, %v622_v41  ;;  %v720_v61 = vshll.u32 %v3628_v18, 16  ;;  %v3673_v13 = vld [vmem:[%s3596_s22 + $0x74] ss:$0 sps:$4 sm:$0x11]  }
  0x20   : > { %944 = vrot.lane.b32.xlu0 %v899_v58, %s3540_s24  ;;  %v639_v0 = vor.u32 %v638_v53, %v634_v45  ;;  %v734_v3 = vrot.slane %v732_v55, 1  ;;  %v739_v6 = vrot.slane %v737_v56, 1  ;;  %v725_v7 = vshll.u32 %v3617_v8, 16  ;;  %v3678_v20 = vld [vmem:[%s3596_s22 + $0x14] ss:$0 sps:$4 sm:$0x11]  }
  0x21   : > { %v632_v9 = vsel %vm620_vm1, %v627_v60, %v631_v54  ;;  %v722_v10 = vrot.slane %v720_v61, 1  ;;  %v3095_v12 = vcombine.low %v2928_v52, %v3660_v57  ;;  %v3087_v19 = vcombine.low %v2912_v62, %v3666_v63  ;;  %v3685_v24 = vld [vmem:[%s3596_s22 + $0x80] ss:$0 sps:$4 sm:$0x11]   ;;  %v2966_v35 = vld [vmem:[%s3596_s22 + $0x6c] sm:$0xe] }
  0x22   : > { %v644_v14 = vsel %vm620_vm1, %v639_v0, %v643_v59  ;;  %v735_v15 = vor.u32 %v734_v3, %v730_v47  ;;  %v727_v16 = vrot.slane %v725_v7, 1  ;;  %v1231_v21 = vshrl.u32 %v3603_v2, 16  ;;  %v2958_v43 = vld [vmem:[%s3596_s22 + $0xc] sm:$0xe]  ;;  %v2967_v45 = vld [vmem:[%s3596_s22 + $0x78] sm:$0xe] }
  0x23   : > { %815 = vrot.lane.b32.xlu1 %v644_v14, %s3541_s25  ;;  %v723_v8 = vor.u32 %v722_v10, %v718_v30  ;;  %v1235_v22 = vrot.slane %v1233_v11, 1  ;;  %v1245_v26 = vshll.u32 %v3095_v12, 16  ;;  %v1238_v27 = vshll.u32 %v3673_v13, 16  ;;  %v3696_v11 = vld [vmem:[%s3596_s22 + $0x20] ss:$0 sps:$4 sm:$0x11]  }
  0x24   : > { %813 = vrot.lane.b32.xlu0 %v632_v9, %s3541_s25  ;;  %v740_v25 = vsel %vm620_vm1, %v735_v15, %v739_v6  ;;  %v1135_v28 = vshrl.u32 %v3610_v5, 16  ;;  %v1149_v30 = vshll.u32 %v3087_v19, 16  ;;  %v1139_v32 = vrot.slane %v1137_v17, 1  ;;  %v2959_v50 = vld [vmem:[%s3596_s22 + $0x18] sm:$0xe] }
  0x25   : > { %v728_v29 = vsel %vm620_vm1, %v723_v8, %v727_v16  ;;  %v1142_v2 = vshll.u32 %v3678_v20, 16  ;;  %v1236_v33 = vor.u32 %v1235_v22, %v1231_v21  ;;  %v1240_v34 = vrot.slane %v1238_v27, 1  ;;  %v2990_v55 = vld [vmem:[%s3596_s22 + $0x78] sm:$0xf]  ;;  %v3716_v56 = vld [vmem:[%s3596_s22 + $0x7c] sm:$0xf] }
  0x26   : > { %v1140_v36 = vor.u32 %v1139_v32, %v1135_v28  ;;  %v1243_v37 = vshrl.u32 %v3095_v12, 16  ;;  %v1247_v39 = vrot.slane %v1245_v26, 1  ;;  %v1250_v5 = vshll.u32 %v3685_v24, 16  ;;  %v2974_v3 = vld [vmem:[%s3596_s22 + $0x18] sm:$0xf] }
  0x27   : > { %831 = vrot.lane.b32.xlu1 %v740_v25, %s3541_s25  ;;  %v1144_v17 = vrot.slane %v1142_v2, 1  ;;  %v1147_v40 = vshrl.u32 %v3087_v19, 16  ;;  %v1151_v41 = vrot.slane %v1149_v30, 1  ;;  %v1154_v42 = vshll.u32 %v3696_v11, 16  ;;  %v3727_v6 = vld [vmem:[%s3596_s22 + $0x1c] sm:$0xf] }
  0x28   : > { %829 = vrot.lane.b32.xlu0 %v728_v29, %s3541_s25  ;;  %v3126_v44 = vcombine.low %v2966_v35, %v3600_v1  ;;  %v1241_v46 = vsel %vm620_vm1, %v1236_v33, %v1240_v34  ;;  %v1248_v47 = vor.u32 %v1247_v39, %v1243_v37  ;;  %v1252_v48 = vrot.slane %v1250_v5, 1  ;;  %v2976_v16 = vld [vmem:[%s3596_s22 + $0x24] sm:$0xf]  ;;  %v3747_v21 = vld [vmem:[%s3596_s22 + $0x80] ss:$0 sps:$4 sm:$0x11]  }
  0x29   : > { %v3118_v49 = vcombine.low %v2958_v43, %v3607_v4  ;;  %v1145_v51 = vsel %vm620_vm1, %v1140_v36, %v1144_v17  ;;  %v1152_v52 = vor.u32 %v1151_v41, %v1147_v40  ;;  %v1156_v53 = vrot.slane %v1154_v42, 1  ;;  %v3754_v27 = vld [vmem:[%s3596_s22 + $0x20] ss:$0 sps:$4 sm:$0x11]   ;;  %v318_v37 = vld [vmem:[%s3596_s22 + $0x78] sm:$0xf] }
  0x2a   : > { %v1430_v1 = vrot.slane %v3126_v44, 1  ;;  %v1431_v54 = vrot.slane %v3673_v13, 1  ;;  %v3127_v58 = vcombine.low %v2967_v45, %v3660_v57  ;;  %v3119_v4 = vcombine.low %v2959_v50, %v3666_v63  ;;  %v2992_v63 = vld [vmem:[%s3596_s22 + $0x84] sm:$0xf]  ;;  %v3736_v13 = vld [vmem:[%s3596_s22 + $0x88] sm:$0xf] }
  0x2b   : > { %1072 = vrot.lane.b32.xlu1 %v3095_v12, %s3539_s23  ;;  %v1253_v59 = vsel %vm620_vm1, %v1248_v47, %v1252_v48  ;;  %v1157_v60 = vsel %vm620_vm1, %v1152_v52, %v1156_v53  ;;  %v1406_v61 = vrot.slane %v3118_v49, 1  ;;  %v1407_v62 = vrot.slane %v3678_v20, 1  ;;  %v3763_v34 = vld [vmem:[%s3596_s22 + $0x2c] ss:$0 sps:$4 sm:$0x11]  }
  0x2c   : > { %1056 = vrot.lane.b32.xlu0 %v3087_v19, %s3539_s23  ;;  %v3142_v0 = vcombine.low %v2990_v55, %v3716_v56  ;;  %v1432_v57 = vsel %vm893_vm0, %v1430_v1, %v1431_v54  ;;  %v1433_v7 = vrot.slane %v3127_v58, 1  ;;  %v1434_v9 = vrot.slane %v3685_v24, 1  ;;  %v3742_v19 = vld [vmem:[%s3596_s22 + $0x28] sm:$0xf]  ;;  %v3768_v39 = vld [vmem:[%s3596_s22 + $0x7c] sm:$0xf] }
  0x2d   : > { %v1409_v10 = vrot.slane %v3119_v4, 1  ;;  %v1410_v12 = vrot.slane %v3696_v11, 1  ;;  %v1408_v14 = vsel %vm893_vm0, %v1406_v61, %v1407_v62  ;;  %v3134_v15 = vcombine.low %v2974_v3, %v3727_v6  ;;  %v3759_v11 = vld [vmem:[%s3596_s22 + $0x8c] ss:$0 sps:$4 sm:$0x11]  }
  0x2e   : > { %v1745_v20 = vshll.u32 %v3142_v0, 16  ;;  %v3143_v8 = vcombine.low %v2992_v63, %v3736_v13  ;;  %v1435_v22 = vsel %vm893_vm0, %v1433_v7, %v1434_v9  ;;  %v3135_v24 = vcombine.low %v2976_v16, %v3742_v19  ;;  %v302_v17 = vld [vmem:[%s3596_s22 + $0x18] sm:$0xf]  ;;  %v3772_v40 = vld [vmem:[%s3596_s22 + $0x1c] sm:$0xf] }
  0x2f   : > { %1342 = vrot.lane.b32.xlu1 %v1241_v46, %s3542_s26  ;;  %v1411_v25 = vsel %vm893_vm0, %v1409_v10, %v1410_v12  ;;  %v1649_v26 = vshll.u32 %v3134_v15, 16  ;;  %v1743_v28 = vshrl.u32 %v3142_v0, 16  ;;  %v1750_v32 = vshll.u32 %v3747_v21, 16  ;;  %v3030_v41 = vld [vmem:[%s3596_s22 + $0x78] sm:$0xe] }
  0x30   : > { %1326 = vrot.lane.b32.xlu0 %v1145_v51, %s3542_s26  ;;  %v1747_v29 = vrot.slane %v1745_v20, 1  ;;  %v1757_v30 = vshll.u32 %v3143_v8, 16  ;;  %v1647_v2 = vshrl.u32 %v3134_v15, 16  ;;  %v1661_v33 = vshll.u32 %v3135_v24, 16  ;;  %v3022_v46 = vld [vmem:[%s3596_s22 + $0x18] sm:$0xe] }
  0x31   : > { %v1651_v35 = vrot.slane %v1649_v26, 1  ;;  %v1654_v36 = vshll.u32 %v3754_v27, 16  ;;  %v1752_v42 = vrot.slane %v1750_v32, 1  ;;  %v1755_v43 = vshrl.u32 %v3143_v8, 16  ;;  %v304_v9 = vld [vmem:[%s3596_s22 + $0x24] sm:$0xf] }
  0x32   : > { %v1748_v5 = vor.u32 %v1747_v29, %v1743_v28  ;;  %v1759_v44 = vrot.slane %v1757_v30, 1  ;;  %v1762_v45 = vshll.u32 %v3759_v11, 16  ;;  %v1659_v47 = vshrl.u32 %v3135_v24, 16  ;;  %v3790_v4 = vld [vmem:[%s3596_s22 + $0x80] ss:$0 sps:$4 sm:$0x11]  }
  0x33   : > { %1344 = vrot.lane.b32.xlu1 %v1253_v59, %s3542_s26  ;;  %v1663_v48 = vrot.slane %v1661_v33, 1  ;;  %v1666_v49 = vshll.u32 %v3763_v34, 16  ;;  %v3781_v50 = vcombine.low %v318_v37, %v3768_v39  ;;  %v1652_v51 = vor.u32 %v1651_v35, %v1647_v2  ;;  %v3807_v10 = vld [vmem:[%s3596_s22 + $0x28] sm:$0xf]  ;;  %v3031_v12 = vld [vmem:[%s3596_s22 + $0x84] sm:$0xe] }
  0x34   : > { %1328 = vrot.lane.b32.xlu0 %v1157_v60, %s3542_s26  ;;  %v1656_v52 = vrot.slane %v1654_v36, 1  ;;  %v3784_v53 = vcombine.low %v302_v17, %v3772_v40  ;;  %v3174_v1 = vcombine.low %v3030_v41, %v3716_v56  ;;  %v3166_v54 = vcombine.low %v3022_v46, %v3727_v6  ;;  %v3796_v56 = vld [vmem:[%s3596_s22 + $0x20] ss:$0 sps:$4 sm:$0x11]   ;;  %v320_v6 = vld [vmem:[%s3596_s22 + $0x84] sm:$0xf] }
  0x35   : > { %v1760_v55 = vor.u32 %v1759_v44, %v1755_v43  ;;  %v1764_v58 = vrot.slane %v1762_v45, 1  ;;  %v1753_v59 = vsel %vm620_vm1, %v1748_v5, %v1752_v42  ;;  %v1664_v60 = vor.u32 %v1663_v48, %v1659_v47  ;;  %v3832_v36 = vld [vmem:[%s3596_s22 + $0x8c] ss:$0 sps:$4 sm:$0x11]  }
  0x36   : > { %v1668_v61 = vrot.slane %v1666_v49, 1  ;;  %v744_v62 = vshll.u32 %v3781_v50, 16  ;;  %v648_v3 = vshll.u32 %v3784_v53, 16  ;;  %v1942_v63 = vrot.slane %v3174_v1, 1 }
  0x37   : > { %1470 = vrot.lane.b32.xlu1 %v1432_v57, %s3543_s27  ;;  %v3802_v57 = vld [vmem:[%s3596_s22 + $0x88] sm:$0xf]  ;;  %v1943_v7 = vrot.slane %v3747_v21, 1  ;;  %v1919_v16 = vrot.slane %v3754_v27, 1  ;;  %v749_v20 = vshll.u32 %v3790_v4, 16  ;;  %v646_v26 = vshrl.u32 %v3784_v53, 16 }
  0x38   : > { %1454 = vrot.lane.b32.xlu0 %v1408_v14, %s3543_s27  ;;  %v1765_v14 = vsel %vm620_vm1, %v1760_v55, %v1764_v58  ;;  %v1669_v21 = vsel %vm620_vm1, %v1664_v60, %v1668_v61  ;;  %v650_v28 = vrot.slane %v648_v3, 1  ;;  %v653_v27 = vshll.u32 %v3796_v56, 16 }
  0x39   : > { %v3824_v29 = vcombine.low %v304_v9, %v3807_v10  ;;  %v3175_v30 = vcombine.low %v3031_v12, %v3736_v13  ;;  %v751_v2 = vrot.slane %v749_v20, 1  ;;  %v1944_v33 = vsel %vm893_vm0, %v1942_v63, %v1943_v7  ;;  %v3837_v13 = vld [vmem:[%s3596_s22 + $0x2c] ss:$0 sps:$4 sm:$0x11]   ;;  %v349_v63 = vld [vmem:[%s3596_s22 + $0x24] sm:$0xe] }
  0x3a   : > { %v651_v17 = vor.u32 %v650_v28, %v646_v26  ;;  %v655_v41 = vrot.slane %v653_v27, 1  ;;  %v1946_v43 = vrot.slane %v3759_v11, 1  ;;  %v1922_v45 = vrot.slane %v3763_v34, 1  ;;  %v348_v34 = vld [vmem:[%s3596_s22 + $0x18] sm:$0xe] }
  0x3b   : > { %1472 = vrot.lane.b32.xlu1 %v1435_v22, %s3543_s27  ;;  %v742_v22 = vshrl.u32 %v3781_v50, 16  ;;  %4975 = vst [vmem:[#allocation2_spill] sm:$0xff] %v3824_v29  ;;  %v1945_v42 = vrot.slane %v3175_v30, 1  ;;  %v761_v49 = vshll.u32 %v3832_v36, 16  ;;  %v658_v1 = vshrl.u32 %v3824_v29, 16 }
  0x3c   : > { %1456 = vrot.lane.b32.xlu0 %v1411_v25, %s3543_s27  ;;  %v3819_v25 = vcombine.low %v320_v6, %v3802_v57  ;;  %v3072_v61 = vcombine.low %v348_v34, %v3772_v40  ;;  %v925_v7 = vrot.slane %v3790_v4, 1  ;;  %v901_v9 = vrot.slane %v3796_v56, 1  ;;  %v2914_v56 = vld [vmem:[%s3596_s22 + $0x24] sm:$0xf]  ;;  %v2932_v28 = vld [vmem:[%s3596_s22 + $0x90] sm:$0xf] }
  0x3d   : > { %v1947_v55 = vsel %vm893_vm0, %v1945_v42, %v1946_v43  ;;  %v3073_v4 = vcombine.low %v349_v63, %v3807_v10  ;;  %v3884_v10 = vld [vmem:[%s3596_s22 + $0x94] sm:$0xf] }
  0x3e   : > { %v756_v37 = vshll.u32 %v3819_v25, 16  ;;  %v754_v47 = vshrl.u32 %v3819_v25, 16 }
  0x3f   : > { %1582 = vrot.lane.b32.xlu1 %v3142_v0, %s3544_s28  ;;  %v1657_v0 = vsel %vm620_vm1, %v1652_v51, %v1656_v52  ;;  %v356_v51 = vld [vmem:[%s3596_s22 + $0x78] sm:$0xe]  ;;  %v656_v52 = vsel %vm620_vm1, %v651_v17, %v655_v41  ;;  %v903_v30 = vrot.slane %v3073_v4, 1  ;;  %v3898_v41 = vld [vmem:[%s3596_s22 + $0x8c] ss:$0 sps:$4 sm:$0x11]  }
  0x40   : > { %1566 = vrot.lane.b32.xlu0 %v3134_v15, %s3544_s28  ;;  %v1918_v15 = vrot.slane %v3166_v54, 1  ;;  %v758_v48 = vrot.slane %v756_v37, 1  ;;  %v665_v54 = vshll.u32 %v3837_v13, 16  ;;  %v3080_v60 = vcombine.low %v356_v51, %v3768_v39  ;;  %v2961_v4 = vld [vmem:[%s3596_s22 + $0x30] sm:$0xe] }
  0x42   : > { %v1920_v5 = vsel %vm893_vm0, %v1918_v15, %v1919_v16  ;;  %v759_v58 = vor.u32 %v758_v48, %v754_v47  ;;  %v667_v6 = vrot.slane %v665_v54, 1  ;;  %v924_v40 = vrot.slane %v3080_v60, 1  ;;  %v2930_v15 = vld [vmem:[%s3596_s22 + $0x84] sm:$0xf]  ;;  %v3868_v16 = vld [vmem:[%s3596_s22 + $0x88] sm:$0xf] }
  0x43   : > { %1584 = vrot.lane.b32.xlu1 %v3143_v8, %s3544_s28  ;;  %v3023_v8 = vld [vmem:[%s3596_s22 + $0x24] sm:$0xe]  ;;  %v1262_v47 = vshll.u32 %v3898_v41, 16 }
  0x44   : > { %1568 = vrot.lane.b32.xlu0 %v3135_v24, %s3544_s28  ;;  %v746_v24 = vrot.slane %v744_v62, 1  ;;  %v3167_v32 = vcombine.low %v3023_v8, %v3742_v19  ;;  %v660_v19 = vshll.u32 %v3824_v29, 16  ;;  %v357_v62 = vld [vmem:[%s3596_s22 + $0x84] sm:$0xe]  ;;  %v3874_v8 = vld [vmem:[%s3596_s22 + $0x28] sm:$0xf] }
  0x45   : > { %v3081_v12 = vcombine.low %v357_v62, %v3802_v57  ;;  %v3088_v26 = vcombine.low %v2914_v56, %v3874_v8  ;;  %v1264_v54 = vrot.slane %v1262_v47, 1  ;;  %v3464_v47 = vld [vmem:[%s4966_s1 + $0x10] ss:$0 sps:$4 sm:$0x33]   ;;  %v310_v29 = vld [vmem:[%s3596_s22 + $0x48] sm:$0xf] }
  0x46   : > { %v747_v35 = vor.u32 %v746_v24, %v742_v22  ;;  %v1921_v44 = vrot.slane %v3167_v32, 1  ;;  %v662_v11 = vrot.slane %v660_v19, 1  ;;  %v3096_v22 = vcombine.low %v2930_v15, %v3868_v16  ;;  %v3902_v19 = vld [vmem:[%s3596_s22 + $0x2c] ss:$0 sps:$4 sm:$0x11]   ;;  %3333 = vmatprep.subr.msk.bf16.mxu0 %vm2315_vm2, %v3464_v47  ;;  %3334 = vmatprep.subr.msk.bf16.mxu1 %vm2315_vm2, %v3464_v47 }
  0x47   : > { %1854 = vrot.lane.b32.xlu1 %v1753_v59, %s3545_s29  ;;  %v763_v59 = vrot.slane %v761_v49, 1  ;;  %v927_v57 = vrot.slane %v3081_v12, 1  ;;  %v926_v24 = vsel %vm893_vm0, %v924_v40, %v925_v7  ;;  %v904_v32 = vrot.slane %v3837_v13, 1  ;;  %v3908_v49 = vld [vmem:[%s3596_s22 + $0x98] ss:$0 sps:$4 sm:$0x11]  }
  0x48   : > { %1838 = vrot.lane.b32.xlu0 %v1657_v0, %s3545_s29  ;;  %v752_v46 = vsel %vm620_vm1, %v747_v35, %v751_v2  ;;  %v1923_v0 = vsel %vm893_vm0, %v1921_v44, %v1922_v45  ;;  %v663_v3 = vor.u32 %v662_v11, %v658_v1  ;;  %v2916_v2 = vld [vmem:[%s3596_s22 + $0x30] sm:$0xf]  ;;  %v1257_v35 = vshll.u32 %v3096_v22, 16 }
  0x49   : > { %v764_v39 = vsel %vm620_vm1, %v759_v58, %v763_v59  ;;  %v905_v13 = vsel %vm893_vm0, %v903_v30, %v904_v32  ;;  %v1255_v43 = vshrl.u32 %v3096_v22, 16  ;;  %v1159_v45 = vshrl.u32 %v3088_v26, 16  ;;  %v2968_v59 = vld [vmem:[%s3596_s22 + $0x84] sm:$0xe]  ;;  %v2978_v30 = vld [vmem:[%s3596_s22 + $0x30] sm:$0xf] }
  0x4a   : > { %v668_v20 = vsel %vm620_vm1, %v663_v3, %v667_v6  ;;  %v1259_v44 = vrot.slane %v1257_v35, 1  ;;  %v1166_v51 = vshll.u32 %v3902_v19, 16  ;;  %v1274_v58 = vshll.u32 %v3908_v49, 16  ;;  %v2960_v3 = vld [vmem:[%s3596_s22 + $0x24] sm:$0xe] }
  0x4b   : > { %1856 = vrot.lane.b32.xlu1 %v1765_v14, %s3545_s29  ;;  %v900_v14 = vrot.slane %v3072_v61, 1  ;;  %v2969_v6 = vld [vmem:[%s3596_s22 + $0x90] sm:$0xe]  ;;  %v3128_v63 = vcombine.low %v2968_v59, %v3868_v16  ;;  %v3943_v32 = vld [vmem:[%s3596_s22 + $0x34] sm:$0xf] }
  0x4c   : > { %1840 = vrot.lane.b32.xlu0 %v1669_v21, %s3545_s29  ;;  %v928_v21 = vrot.slane %v3832_v36, 1  ;;  %v3097_v36 = vcombine.low %v2932_v28, %v3884_v10  ;;  %v1260_v1 = vor.u32 %v1259_v44, %v1255_v43  ;;  %v1168_v60 = vrot.slane %v1166_v51, 1  ;;  %v2996_v35 = vld [vmem:[%s3596_s22 + $0x9c] sm:$0xf] }
  0x4d   : > { %v902_v27 = vsel %vm893_vm0, %v900_v14, %v901_v9  ;;  %v1276_v12 = vrot.slane %v1274_v58, 1  ;;  %v1436_v56 = vrot.slane %v3128_v63, 1  ;;  %v1413_v28 = vrot.slane %v3902_v19, 1  ;;  %v3973_v51 = vld [vmem:[%s3596_s22 + $0x38] ss:$0 sps:$4 sm:$0x11]  }
  0x4e   : > { %v929_v37 = vsel %vm893_vm0, %v927_v57, %v928_v21  ;;  %v1269_v42 = vshll.u32 %v3097_v36, 16  ;;  %v1267_v11 = vshrl.u32 %v3097_v36, 16  ;;  %v1265_v7 = vsel %vm620_vm1, %v1260_v1, %v1264_v54  ;;  %v2994_v57 = vld [vmem:[%s3596_s22 + $0x90] sm:$0xf]  ;;  %v3935_v21 = vld [vmem:[%s3596_s22 + $0x94] sm:$0xf] }
  0x4f   : > { %1982 = vrot.lane.b32.xlu1 %v1944_v33, %s3546_s30  ;;  %v3890_v33 = vld [vmem:[%s3596_s22 + $0x34] sm:$0xf]  ;;  %v3136_v19 = vcombine.low %v2978_v30, %v3943_v32  ;;  %v3976_v1 = vld [vmem:[%s3596_s22 + $0xa4] ss:$0 sps:$4 sm:$0x11]  }
  0x50   : > { %1966 = vrot.lane.b32.xlu0 %v1920_v5, %s3546_s30  ;;  %v1161_v5 = vshll.u32 %v3088_v26, 16  ;;  %v3089_v17 = vcombine.low %v2916_v2, %v3890_v33  ;;  %v3144_v2 = vcombine.low %v2994_v57, %v3935_v21  ;;  %v322_v63 = vld [vmem:[%s3596_s22 + $0x90] sm:$0xf] }
  0x52   : > { %v1163_v48 = vrot.slane %v1161_v5, 1  ;;  %v1171_v61 = vshrl.u32 %v3089_v17, 16  ;;  %v3955_v5 = vld [vmem:[%s3596_s22 + $0x40] sm:$0xf]  ;;  %v1769_v43 = vshll.u32 %v3144_v2, 16 }
  0x53   : > { %833 = vrot.lane.b32.xlu1 %v752_v46, %s3541_s25  ;;  %v1173_v46 = vshll.u32 %v3089_v17, 16 }
  0x54   : > { %817 = vrot.lane.b32.xlu0 %v656_v52, %s3541_s25  ;;  %v3912_v52 = vld [vmem:[%s3596_s22 + $0x38] ss:$0 sps:$4 sm:$0x11]   ;;  %v1164_v34 = vor.u32 %v1163_v48, %v1159_v45  ;;  %v1771_v58 = vrot.slane %v1769_v43, 1 }
  0x55   : > { %v1175_v62 = vrot.slane %v1173_v46, 1  ;;  %v3966_v46 = vld [vmem:[%s3596_s22 + $0x98] ss:$0 sps:$4 sm:$0x11]  }
  0x56   : > { %v1169_v40 = vsel %vm620_vm1, %v1164_v34, %v1168_v60  ;;  %v1767_v34 = vshrl.u32 %v3144_v2, 16  ;;  %v1774_v59 = vshll.u32 %v3966_v46, 16  ;;  %v1671_v60 = vshrl.u32 %v3136_v19, 16 }
  0x57   : > { %1984 = vrot.lane.b32.xlu1 %v1947_v55, %s3546_s30  ;;  %v1271_v55 = vrot.slane %v1269_v42, 1  ;;  %v1176_v14 = vor.u32 %v1175_v62, %v1171_v61  ;;  %v2317_v61 = vsel %vm2315_vm2, %v3464_v47, 0  ;;  %v3474_v62 = vld [vmem:[%s4966_s1] sm:$0xff]  }
  0x58   : > { %1968 = vrot.lane.b32.xlu0 %v1923_v0, %s3546_s30  ;;  %v1178_v0 = vshll.u32 %v3912_v52, 16  ;;  %3290 = vmatpush3.bf16.msra.mxu0 %v2317_v61  ;;  %v4034_v47 = vld [vmem:[%s3596_s22 + $0x40] sm:$0xf] }
  0x59   : > { %v1272_v9 = vor.u32 %v1271_v55, %v1267_v11  ;;  %v3469_v11 = vld [vmem:[%s4966_s1 + $0x8] sm:$0xff]   ;;  %v3983_v55 = vld [vmem:[%s3596_s22 + $0x44] ss:$0 sps:$4 sm:$0x11]   ;;  %3330 = vmatpush3.bf16.msra.mxu1 %v2317_v61 }
  0x5a   : > { %v1180_v15 = vrot.slane %v1178_v0, 1  ;;  %v3032_v0 = vld [vmem:[%s3596_s22 + $0x90] sm:$0xe]  ;;  %3291 = vmatprep.subr.bf16.mxu0 %v3469_v11  ;;  %3328 = vmatprep.subr.bf16.mxu1 %v3469_v11 }
  0x5b   : > { %835 = vrot.lane.b32.xlu1 %v764_v39, %s3541_s25  ;;  %v3120_v39 = vcombine.low %v2960_v3, %v3874_v8  ;;  %v1277_v16 = vsel %vm620_vm1, %v1272_v9, %v1276_v12  ;;  %v1437_v8 = vrot.slane %v3898_v41, 1  ;;  %v1786_v12 = vshll.u32 %v3976_v1, 16 }
  0x5c   : > { %819 = vrot.lane.b32.xlu0 %v668_v20, %s3541_s25  ;;  %v3129_v20 = vcombine.low %v2969_v6, %v3884_v10  ;;  %v1678_v6 = vshll.u32 %v3973_v51, 16  ;;  %3292 = vmatpush3.bf16.msra.mxu0 %v3469_v11 }
  0x5d   : > { %3331 = vmatpush3.bf16.msra.mxu1 %v3469_v11  ;;  %3293 = vmatprep.subr.bf16.mxu0 %v3474_v62 }
  0x5e   : > { %v1439_v10 = vrot.slane %v3129_v20, 1  ;;  %3329 = vmatprep.subr.bf16.mxu1 %v3474_v62 }
  0x5f   : > { %962 = vrot.lane.b32.xlu1 %v926_v24, %s3540_s24  ;;  %v1181_v24 = vsel %vm620_vm1, %v1176_v14, %v1180_v15 }
  0x60   : > { %946 = vrot.lane.b32.xlu0 %v902_v27, %s3540_s24  ;;  %v1440_v27 = vrot.slane %v3908_v49, 1  ;;  %v1673_v49 = vshll.u32 %v3136_v19, 16  ;;  %3294 = vmatpush3.bf16.msra.mxu0 %v3474_v62 }
  0x61   : > { %3332 = vmatpush3.bf16.msra.mxu1 %v3474_v62 }
  0x62   : > { %v1441_v45 = vsel %vm893_vm0, %v1439_v10, %v1440_v27  ;;  %v1675_v3 = vrot.slane %v1673_v49, 1  ;;  %v1788_v10 = vrot.slane %v1786_v12, 1  ;;  %v4061_v12 = vld [vmem:[%s3596_s22 + $0xa4] ss:$0 sps:$4 sm:$0x11]  }
  0x63   : > { %964 = vrot.lane.b32.xlu1 %v929_v37, %s3540_s24  ;;  %v2980_v37 = vld [vmem:[%s3596_s22 + $0x3c] sm:$0xf] }
  0x64   : > { %948 = vrot.lane.b32.xlu0 %v905_v13, %s3540_s24  ;;  %v1416_v13 = vrot.slane %v3912_v52, 1  ;;  %v3137_v44 = vcombine.low %v2980_v37, %v3955_v5 }
  0x66   : > { %v1685_v54 = vshll.u32 %v3137_v44, 16  ;;  %v1683_v15 = vshrl.u32 %v3137_v44, 16 }
  0x67   : > { %1074 = vrot.lane.b32.xlu1 %v3096_v22, %s3539_s23  ;;  %v3121_v22 = vcombine.low %v2961_v4, %v3890_v33  ;;  %v1438_v33 = vsel %vm893_vm0, %v1436_v56, %v1437_v8  ;;  %v1690_v4 = vshll.u32 %v3983_v55, 16  ;;  %v1772_v56 = vor.u32 %v1771_v58, %v1767_v34  ;;  %v3025_v58 = vld [vmem:[%s3596_s22 + $0x3c] sm:$0xe] }
  0x68   : > { %1058 = vrot.lane.b32.xlu0 %v3088_v26, %s3539_s23  ;;  %v1412_v26 = vrot.slane %v3120_v39, 1  ;;  %v306_v39 = vld [vmem:[%s3596_s22 + $0x30] sm:$0xf]  ;;  %v1687_v20 = vrot.slane %v1685_v54, 1  ;;  %v1776_v8 = vrot.slane %v1774_v59, 1  ;;  %v1925_v34 = vrot.slane %v3973_v51, 1 }
  0x69   : > { %v1415_v41 = vrot.slane %v3121_v22, 1  ;;  %v1676_v22 = vor.u32 %v1675_v3, %v1671_v60 }
  0x6b   : > { %1076 = vrot.lane.b32.xlu1 %v3097_v36, %s3539_s23  ;;  %v3949_v36 = vld [vmem:[%s3596_s22 + $0xa0] sm:$0xf]  ;;  %v1417_v48 = vsel %vm893_vm0, %v1415_v41, %v1416_v13 }
  0x6c   : > { %1060 = vrot.lane.b32.xlu0 %v3089_v17, %s3539_s23  ;;  %v1414_v17 = vsel %vm893_vm0, %v1412_v26, %v1413_v28  ;;  %v3145_v42 = vcombine.low %v2996_v35, %v3949_v36  ;;  %v3176_v28 = vcombine.low %v3032_v0, %v3935_v21  ;;  %v1692_v35 = vrot.slane %v1690_v4, 1 }
  0x6d   : > { %v1777_v21 = vsel %vm620_vm1, %v1772_v56, %v1776_v8  ;;  %v4070_v56 = vld [vmem:[%s3596_s22 + $0x44] ss:$0 sps:$4 sm:$0x11]  }
  0x6e   : > { %v1781_v52 = vshll.u32 %v3145_v42, 16  ;;  %v1779_v9 = vshrl.u32 %v3145_v42, 16  ;;  %v1948_v43 = vrot.slane %v3176_v28, 1  ;;  %v1952_v28 = vrot.slane %v3976_v1, 1 }
  0x6f   : > { %1346 = vrot.lane.b32.xlu1 %v1265_v7, %s3542_s26  ;;  %v3994_v7 = vld [vmem:[%s3596_s22 + $0x94] sm:$0xf] }
  0x70   : > { %1330 = vrot.lane.b32.xlu0 %v1169_v40, %s3542_s26  ;;  %v3999_v40 = vld [vmem:[%s3596_s22 + $0x34] sm:$0xf]  ;;  %v1783_v14 = vrot.slane %v1781_v52, 1  ;;  %v4006_v57 = vcombine.low %v322_v63, %v3994_v7 }
  0x71   : > { %v4009_v26 = vcombine.low %v306_v39, %v3999_v40 }
  0x72   : > { %4976 = vst [vmem:[#allocation3_spill] sm:$0xff] %v4006_v57  ;;  %v1784_v30 = vor.u32 %v1783_v14, %v1779_v9  ;;  %v768_v37 = vshll.u32 %v4006_v57, 16  ;;  %v3169_v9 = vcombine.low %v3025_v58, %v3955_v5 }
  0x73   : > { %1348 = vrot.lane.b32.xlu1 %v1277_v16, %s3542_s26  ;;  %v3024_v16 = vld [vmem:[%s3596_s22 + $0x30] sm:$0xe]  ;;  %4977 = vst [vmem:[#allocation4_spill] sm:$0xff] %v4009_v26  ;;  %v672_v13 = vshll.u32 %v4009_v26, 16  ;;  %v670_v62 = vshrl.u32 %v4009_v26, 16 }
  0x74   : > { %1332 = vrot.lane.b32.xlu0 %v1181_v24, %s3542_s26  ;;  %v1680_v24 = vrot.slane %v1678_v6, 1  ;;  %v3168_v27 = vcombine.low %v3024_v16, %v3943_v32  ;;  %v1789_v52 = vsel %vm620_vm1, %v1784_v30, %v1788_v10  ;;  %v770_v59 = vrot.slane %v768_v37, 1  ;;  %v358_v37 = vld [vmem:[%s3596_s22 + $0x90] sm:$0xe] }
  0x75   : > { %v674_v0 = vrot.slane %v672_v13, 1  ;;  %v1927_v10 = vrot.slane %v3169_v9, 1  ;;  %v785_v30 = vshll.u32 %v4061_v12, 16 }
  0x76   : > { %v1681_v32 = vsel %vm620_vm1, %v1676_v22, %v1680_v24  ;;  %v1924_v54 = vrot.slane %v3168_v27, 1  ;;  %v1928_v27 = vrot.slane %v3983_v55, 1 }
  0x77   : > { %1474 = vrot.lane.b32.xlu1 %v1438_v33, %s3543_s27  ;;  %v4015_v33 = vld [vmem:[%s3596_s22 + $0x98] ss:$0 sps:$4 sm:$0x11]   ;;  %v675_v16 = vor.u32 %v674_v0, %v670_v62  ;;  %v351_v62 = vld [vmem:[%s3596_s22 + $0x3c] sm:$0xe] }
  0x78   : > { %1458 = vrot.lane.b32.xlu0 %v1414_v17, %s3543_s27  ;;  %v4021_v17 = vld [vmem:[%s3596_s22 + $0x38] ss:$0 sps:$4 sm:$0x11]   ;;  %v773_v60 = vshll.u32 %v4015_v33, 16 }
  0x79   : > { %v677_v3 = vshll.u32 %v4021_v17, 16 }
  0x7b   : > { %1476 = vrot.lane.b32.xlu1 %v1441_v45, %s3543_s27  ;;  %v308_v45 = vld [vmem:[%s3596_s22 + $0x3c] sm:$0xf]  ;;  %v679_v5 = vrot.slane %v677_v3, 1 }
  0x7c   : > { %1460 = vrot.lane.b32.xlu0 %v1417_v48, %s3543_s27  ;;  %v3033_v48 = vld [vmem:[%s3596_s22 + $0x9c] sm:$0xe]  ;;  %v4053_v6 = vcombine.low %v308_v45, %v4034_v47 }
  0x7d   : > { %v3177_v51 = vcombine.low %v3033_v48, %v3949_v36  ;;  %v1926_v36 = vsel %vm893_vm0, %v1924_v54, %v1925_v34  ;;  %v680_v13 = vsel %vm620_vm1, %v675_v16, %v679_v5  ;;  %v1929_v34 = vsel %vm893_vm0, %v1927_v10, %v1928_v27  ;;  %v2920_v27 = vld [vmem:[%s3596_s22 + $0x48] sm:$0xf] }
  0x7e   : > { %4979 = vst [vmem:[#allocation6_spill] sm:$0xff] %v4053_v6  ;;  %v684_v8 = vshll.u32 %v4053_v6, 16  ;;  %v934_v10 = vrot.slane %v4061_v12, 1 }
  0x7f   : > { %1586 = vrot.lane.b32.xlu1 %v3144_v2, %s3544_s28  ;;  %v1688_v2 = vor.u32 %v1687_v20, %v1683_v15  ;;  %v775_v15 = vrot.slane %v773_v60, 1  ;;  %v1951_v22 = vrot.slane %v3177_v51, 1  ;;  %v2934_v51 = vld [vmem:[%s3596_s22 + $0x9c] sm:$0xf] }
  0x80   : > { %1570 = vrot.lane.b32.xlu0 %v3136_v19, %s3544_s28  ;;  %v324_v19 = vld [vmem:[%s3596_s22 + $0x9c] sm:$0xf]  ;;  %v686_v1 = vrot.slane %v684_v8, 1  ;;  %v4125_v8 = vld [vmem:[%s3596_s22 + $0xac] sm:$0xf] }
  0x81   : > { %v1693_v11 = vsel %vm620_vm1, %v1688_v2, %v1692_v35  ;;  %v1953_v48 = vsel %vm893_vm0, %v1951_v22, %v1952_v28 }
  0x83   : > { %1588 = vrot.lane.b32.xlu1 %v3145_v42, %s3544_s28  ;;  %v4029_v42 = vld [vmem:[%s3596_s22 + $0xa0] sm:$0xf] }
  0x84   : > { %1572 = vrot.lane.b32.xlu0 %v3137_v44, %s3544_s28  ;;  %v1949_v44 = vrot.slane %v3966_v46, 1  ;;  %v766_v46 = vshrl.u32 %v4006_v57, 16  ;;  %v4048_v61 = vcombine.low %v324_v19, %v4029_v42  ;;  %v682_v19 = vshrl.u32 %v4053_v6, 16 }
  0x86   : > { %4978 = vst [vmem:[#allocation5_spill] sm:$0xff] %v4048_v61  ;;  %v1950_v39 = vsel %vm893_vm0, %v1948_v43, %v1949_v44  ;;  %v771_v14 = vor.u32 %v770_v59, %v766_v46  ;;  %v780_v20 = vshll.u32 %v4048_v61, 16  ;;  %v778_v35 = vshrl.u32 %v4048_v61, 16  ;;  %v359_v59 = vld [vmem:[%s3596_s22 + $0x9c] sm:$0xe] }
  0x87   : > { %v4024_v41 = vpop.permute.xlu1 %1070  ;;  %1858 = vrot.lane.b32.xlu1 %v1777_v21, %s3545_s29  ;;  %v689_v43 = vshll.u32 %v4070_v56, 16  ;;  %v3082_v44 = vcombine.low %v358_v37, %v3994_v7  ;;  %v687_v58 = vor.u32 %v686_v1, %v682_v19  ;;  %v931_v7 = vrot.slane %v4015_v33, 1  ;;  %v2918_v33 = vld [vmem:[%s3596_s22 + $0x3c] sm:$0xf] }
  0x88   : > { %v4038_v49 = vpop.permute.xlu0 %1054  ;;  %1842 = vrot.lane.b32.xlu0 %v1681_v32, %s3545_s29  ;;  %v776_v2 = vsel %vm620_vm1, %v771_v14, %v775_v15  ;;  %v782_v21 = vrot.slane %v780_v20, 1  ;;  %v350_v32 = vld [vmem:[%s3596_s22 + $0x30] sm:$0xe]  ;;  %v4109_v14 = vld [vmem:[%s3596_s22 + $0xa0] sm:$0xf]  ;;  %v3075_v20 = vcombine.low %v351_v62, %v4034_v47  ;;  %v910_v37 = vrot.slane %v4070_v56, 1 }
  0x89   : > { %v3074_v45 = vcombine.low %v350_v32, %v3999_v40  ;;  %v691_v46 = vrot.slane %v689_v43, 1  ;;  %v907_v40 = vrot.slane %v4021_v17, 1  ;;  %v930_v0 = vrot.slane %v3082_v44, 1  ;;  %v4145_v1 = vld [vmem:[%s3596_s22 + $0xa4] ss:$0 sps:$4 sm:$0x11]  }
  0x8a   : > { %v3098_v5 = vcombine.low %v2934_v51, %v4109_v14  ;;  %v4161_v62 = vld [vmem:[%s3596_s22 + $0xb0] ss:$0 sps:$4 sm:$0x11]  }
  0x8b   : > { %v4056_v63 = vpop.permute.xlu1 %958  ;;  %1860 = vrot.lane.b32.xlu1 %v1789_v52, %s3545_s29  ;;  %v783_v52 = vor.u32 %v782_v21, %v778_v35  ;;  %v906_v3 = vrot.slane %v3074_v45, 1  ;;  %v692_v15 = vsel %vm620_vm1, %v687_v58, %v691_v46  ;;  %v932_v22 = vsel %vm893_vm0, %v930_v0, %v931_v7  ;;  %v4167_v51 = vld [vmem:[%s3596_s22 + $0x50] ss:$0 sps:$4 sm:$0x11]  }
  0x8c   : > { %1844 = vrot.lane.b32.xlu0 %v1693_v11, %s3545_s29  ;;  %v787_v11 = vrot.slane %v785_v30, 1  ;;  %v4133_v30 = vld [vmem:[%s3596_s22 + $0x4c] sm:$0xf]  ;;  %v909_v21 = vrot.slane %v3075_v20, 1  ;;  %v1281_v12 = vshll.u32 %v3098_v5, 16 }
  0x8d   : > { %v4066_v4 = vpop.permute.xlu0 %942  ;;  %v908_v35 = vsel %vm893_vm0, %v906_v3, %v907_v40  ;;  %v3091_v19 = vcombine.low %v2920_v27, %v4133_v30 }
  0x8e   : > { %v788_v9 = vsel %vm620_vm1, %v783_v52, %v787_v11  ;;  %v911_v56 = vsel %vm893_vm0, %v909_v21, %v910_v37  ;;  %v1283_v46 = vrot.slane %v1281_v12, 1  ;;  %v1202_v37 = vshll.u32 %v4167_v51, 16 }
  0x8f   : > { %1986 = vrot.lane.b32.xlu1 %v1950_v39, %s3546_s30  ;;  %v3083_v39 = vcombine.low %v359_v59, %v4029_v42  ;;  %v2936_v42 = vld [vmem:[%s3596_s22 + $0xa8] sm:$0xf]  ;;  %v1197_v58 = vshll.u32 %v3091_v19, 16  ;;  %v1286_v59 = vshll.u32 %v4145_v1, 16  ;;  %v1195_v21 = vshrl.u32 %v3091_v19, 16 }
  0x90   : > { %v4074_v24 = vpop.permute.xlu1 %960  ;;  %1970 = vrot.lane.b32.xlu0 %v1926_v36, %s3546_s30  ;;  %v4117_v36 = vld [vmem:[%s3596_s22 + $0x40] sm:$0xf] }
  0x91   : > { %v933_v28 = vrot.slane %v3083_v39, 1  ;;  %v3090_v47 = vcombine.low %v2918_v33, %v4117_v36  ;;  %v1288_v20 = vrot.slane %v1286_v59, 1  ;;  %v2963_v59 = vld [vmem:[%s3596_s22 + $0x48] sm:$0xe] }
  0x92   : > { %v4087_v55 = vpop.permute.xlu0 %944 }
  0x93   : > { %837 = vrot.lane.b32.xlu1 %v776_v2, %s3541_s25  ;;  %v935_v43 = vsel %vm893_vm0, %v933_v28, %v934_v10  ;;  %v1185_v44 = vshll.u32 %v3090_v47, 16  ;;  %v1183_v7 = vshrl.u32 %v3090_v47, 16  ;;  %v1298_v28 = vshll.u32 %v4161_v62, 16  ;;  %v2962_v10 = vld [vmem:[%s3596_s22 + $0x3c] sm:$0xe] }
  0x94   : > { %821 = vrot.lane.b32.xlu0 %v680_v13, %s3541_s25  ;;  %v3099_v13 = vcombine.low %v2936_v42, %v4125_v8 }
  0x95   : > { %v4094_v54 = vpop.permute.xlu1 %815  ;;  %v1187_v40 = vrot.slane %v1185_v44, 1  ;;  %v4185_v44 = vld [vmem:[%s3596_s22 + $0xac] sm:$0xf] }
  0x96   : > { %v4098_v60 = vpop.permute.xlu0 %813  ;;  %v1293_v11 = vshll.u32 %v3099_v13, 16  ;;  %v1291_v33 = vshrl.u32 %v3099_v13, 16 }
  0x97   : > { %1988 = vrot.lane.b32.xlu1 %v1953_v48, %s3546_s30  ;;  %v4153_v48 = vld [vmem:[%s3596_s22 + $0x44] ss:$0 sps:$4 sm:$0x11]   ;;  %v1188_v42 = vor.u32 %v1187_v40, %v1183_v7  ;;  %v1204_v40 = vrot.slane %v1202_v37, 1 }
  0x98   : > { %1972 = vrot.lane.b32.xlu0 %v1929_v34, %s3546_s30  ;;  %v1279_v34 = vshrl.u32 %v3098_v5, 16  ;;  %v1190_v3 = vshll.u32 %v4153_v48, 16  ;;  %v1419_v37 = vrot.slane %v4153_v48, 1 }
  0x99   : > { %v4112_v17 = vpop.permute.xlu1 %831 }
  0x9a   : > { %v4119_v16 = vpop.permute.xlu0 %829  ;;  %v1284_v39 = vor.u32 %v1283_v46, %v1279_v34  ;;  %v1300_v46 = vrot.slane %v1298_v28, 1 }
  0x9b   : > { %839 = vrot.lane.b32.xlu1 %v788_v9, %s3541_s25 }
  0x9c   : > { %823 = vrot.lane.b32.xlu0 %v692_v15, %s3541_s25  ;;  %v2970_v15 = vld [vmem:[%s3596_s22 + $0x9c] sm:$0xe]  ;;  %v1289_v34 = vsel %vm620_vm1, %v1284_v39, %v1288_v20  ;;  %v4206_v39 = vld [vmem:[%s3596_s22 + $0xb8] sm:$0xf] }
  0x9d   : > { %v4135_v2 = vpop.permute.xlu1 %1072 }
  0x9e   : > { %v4139_v32 = vpop.permute.xlu0 %1056 }
  0x9f   : > { %966 = vrot.lane.b32.xlu1 %v932_v22, %s3540_s24  ;;  %v1295_v22 = vrot.slane %v1293_v11, 1  ;;  %v2971_v11 = vld [vmem:[%s3596_s22 + $0xa8] sm:$0xe] }
  0xa0   : > { %950 = vrot.lane.b32.xlu0 %v908_v35, %s3540_s24  ;;  %v1192_v35 = vrot.slane %v1190_v3, 1  ;;  %v2982_v3 = vld [vmem:[%s3596_s22 + $0x48] sm:$0xf] }
  0xa1   : > { %v4149_v45 = vpop.permute.xlu1 %1342 }
  0xa2   : > { %v4155_v52 = vpop.permute.xlu0 %1326 }
  0xa3   : > { %968 = vrot.lane.b32.xlu1 %v935_v43, %s3540_s24  ;;  %v2998_v43 = vld [vmem:[%s3596_s22 + $0xa8] sm:$0xf] }
  0xa4   : > { %952 = vrot.lane.b32.xlu0 %v911_v56, %s3540_s24  ;;  %v3122_v56 = vcombine.low %v2962_v10, %v4117_v36  ;;  %v4199_v36 = vcombine.low %v2998_v43, %v4185_v44  ;;  %v4202_v10 = vld [vmem:[%s3596_s22 + $0x4c] sm:$0xf] }
  0xa5   : > { %v4163_v0 = vpop.permute.xlu1 %1344 }
  0xa6   : > { %v4169_v9 = vpop.permute.xlu0 %1328 }
  0xa7   : > { %1078 = vrot.lane.b32.xlu1 %v3098_v5, %s3539_s23  ;;  %v1199_v5 = vrot.slane %v1197_v58, 1  ;;  %v1296_v58 = vor.u32 %v1295_v22, %v1291_v33  ;;  %v3131_v33 = vcombine.low %v2971_v11, %v4125_v8  ;;  %v3123_v22 = vcombine.low %v2963_v59, %v4133_v30  ;;  %v4226_v30 = vld [vmem:[%s3596_s22 + $0x58] sm:$0xf]  ;;  %v4232_v11 = vld [vmem:[%s3596_s22 + $0xb0] ss:$0 sps:$4 sm:$0x11]  }
  0xa8   : > { %1062 = vrot.lane.b32.xlu0 %v3090_v47, %s3539_s23  ;;  %v3130_v47 = vcombine.low %v2970_v15, %v4109_v14  ;;  %v1193_v14 = vsel %vm620_vm1, %v1188_v42, %v1192_v35  ;;  %v1443_v42 = vrot.slane %v4145_v1, 1  ;;  %v1418_v35 = vrot.slane %v3122_v56, 1  ;;  %v2984_v1 = vld [vmem:[%s3596_s22 + $0x54] sm:$0xf] }
  0xa9   : > { %v4176_v27 = vpop.permute.xlu1 %1470  ;;  %v1301_v28 = vsel %vm620_vm1, %v1296_v58, %v1300_v46  ;;  %v4219_v8 = vcombine.low %v2982_v3, %v4202_v10  ;;  %v1793_v56 = vshll.u32 %v4199_v36, 16  ;;  %v1446_v58 = vrot.slane %v4161_v62, 1 }
  0xaa   : > { %v4179_v12 = vpop.permute.xlu0 %1454  ;;  %v1442_v20 = vrot.slane %v3130_v47, 1  ;;  %v1421_v46 = vrot.slane %v3123_v22, 1  ;;  %v1422_v59 = vrot.slane %v4167_v51, 1  ;;  %v1420_v3 = vsel %vm893_vm0, %v1418_v35, %v1419_v37  ;;  %v4258_v35 = vld [vmem:[%s3596_s22 + $0x50] ss:$0 sps:$4 sm:$0x11]  }
  0xab   : > { %1080 = vrot.lane.b32.xlu1 %v3099_v13, %s3539_s23  ;;  %v1200_v13 = vor.u32 %v1199_v5, %v1195_v21  ;;  %v1791_v51 = vshrl.u32 %v4199_v36, 16  ;;  %v2016_v22 = vsel %vm1998_vm3, %v3628_v18, %v4119_v16  ;;  %v4268_v16 = vld [vmem:[%s3596_s22 + $0xbc] ss:$0 sps:$4 sm:$0x11]  }
  0xac   : > { %1064 = vrot.lane.b32.xlu0 %v3091_v19, %s3539_s23  ;;  %v3000_v19 = vld [vmem:[%s3596_s22 + $0xb4] sm:$0xf]  ;;  %v1444_v48 = vsel %vm893_vm0, %v1442_v20, %v1443_v42  ;;  %v1795_v20 = vrot.slane %v1793_v56, 1  ;;  %v1798_v42 = vshll.u32 %v4232_v11, 16 }
  0xad   : > { %v4192_v7 = vpop.permute.xlu1 %1472  ;;  %v1205_v5 = vsel %vm620_vm1, %v1200_v13, %v1204_v40  ;;  %v4222_v47 = vcombine.low %v3000_v19, %v4206_v39  ;;  %v4241_v13 = vcombine.low %v2984_v1, %v4226_v30  ;;  %v1697_v19 = vshll.u32 %v4219_v8, 16 }
  0xae   : > { %v4196_v15 = vpop.permute.xlu0 %1456  ;;  %v1423_v1 = vsel %vm893_vm0, %v1421_v46, %v1422_v59  ;;  %v4276_v46 = vld [vmem:[%s3596_s22 + $0x5c] ss:$0 sps:$4 sm:$0x11]  }
  0xaf   : > { %1350 = vrot.lane.b32.xlu1 %v1289_v34, %s3542_s26  ;;  %v1445_v34 = vrot.slane %v3131_v33, 1  ;;  %v1805_v33 = vshll.u32 %v4222_v47, 16  ;;  %v1709_v18 = vshll.u32 %v4241_v13, 16  ;;  %v1803_v6 = vshrl.u32 %v4222_v47, 16 }
  0xb0   : > { %1334 = vrot.lane.b32.xlu0 %v1193_v14, %s3542_s26  ;;  %v3034_v14 = vld [vmem:[%s3596_s22 + $0xa8] sm:$0xe]  ;;  %v1714_v57 = vshll.u32 %v4276_v46, 16 }
  0xb1   : > { %v4214_v21 = vpop.permute.xlu1 %1582  ;;  %v1447_v37 = vsel %vm893_vm0, %v1445_v34, %v1446_v58  ;;  %v1807_v61 = vrot.slane %v1805_v33, 1  ;;  %v1796_v34 = vor.u32 %v1795_v20, %v1791_v51  ;;  %v1800_v58 = vrot.slane %v1798_v42, 1  ;;  %v326_v20 = vld [vmem:[%s3596_s22 + $0xa8] sm:$0xf]  ;;  %v4288_v42 = vld [vmem:[%s3596_s22 + $0xac] sm:$0xf] }
  0xb2   : > { %v4228_v43 = vpop.permute.xlu0 %1566  ;;  %v1810_v33 = vshll.u32 %v4268_v16, 16  ;;  %v1711_v51 = vrot.slane %v1709_v18, 1 }
  0xb3   : > { %1352 = vrot.lane.b32.xlu1 %v1301_v28, %s3542_s26  ;;  %v3178_v28 = vcombine.low %v3034_v14, %v4185_v44  ;;  %v1695_v44 = vshrl.u32 %v4219_v8, 16  ;;  %v1699_v14 = vrot.slane %v1697_v19, 1  ;;  %v1707_v19 = vshrl.u32 %v4241_v13, 16 }
  0xb4   : > { %1336 = vrot.lane.b32.xlu0 %v1205_v5, %s3542_s26  ;;  %v2000_v5 = vsel %vm1998_vm3, %v3633_v23, %v4098_v60  ;;  %v2049_v23 = vsel %vm2031_vm4, %v2016_v22, %v4056_v63  ;;  %v1801_v18 = vsel %vm620_vm1, %v1796_v34, %v1800_v58 }
  0xb5   : > { %v4243_v40 = vpop.permute.xlu1 %1584  ;;  %v2033_v59 = vsel %vm2031_vm4, %v2000_v5, %v4066_v4  ;;  %v2082_v4 = vsel %vm2064_vm5, %v2049_v23, %v4024_v41  ;;  %v1700_v5 = vor.u32 %v1699_v14, %v1695_v44  ;;  %v4294_v26 = vrot.slane %v3178_v28, 1  ;;  %v4306_v41 = vld [vmem:[%s3596_s22 + $0x4c] sm:$0xf] }
  0xb6   : > { %v4248_v62 = vpop.permute.xlu0 %1568  ;;  %v1712_v14 = vor.u32 %v1711_v51, %v1707_v19  ;;  %v4367_v51 = vld [vmem:[%s3596_s22 + $0xb8] sm:$0xf] }
  0xb7   : > { %1478 = vrot.lane.b32.xlu1 %v1444_v48, %s3543_s27  ;;  %v3026_v48 = vld [vmem:[%s3596_s22 + $0x48] sm:$0xe] }
  0xb8   : > { %1462 = vrot.lane.b32.xlu0 %v1420_v3, %s3543_s27  ;;  %v1702_v3 = vshll.u32 %v4258_v35, 16  ;;  %v3170_v63 = vcombine.low %v3026_v48, %v4202_v10  ;;  %v2066_v10 = vsel %vm2064_vm5, %v2033_v59, %v4038_v49  ;;  %v4315_v49 = vcombine.low %v326_v20, %v4288_v42 }
  0xb9   : > { %v1855_v56 = vpop.permute.xlu1 %1854 }
  0xba   : > { %v1839_v60 = vpop.permute.xlu0 %1838 }
  0xbb   : > { %1480 = vrot.lane.b32.xlu1 %v1447_v37, %s3543_s27  ;;  %v1808_v37 = vor.u32 %v1807_v61, %v1803_v6  ;;  %v2099_v61 = vsel %vm2097_vm6, %v2066_v10, %v4155_v52  ;;  %v1812_v52 = vrot.slane %v1810_v33, 1  ;;  %v328_v33 = vld [vmem:[%s3596_s22 + $0xb4] sm:$0xf] }
  0xbc   : > { %1464 = vrot.lane.b32.xlu0 %v1423_v1, %s3543_s27  ;;  %v2115_v1 = vsel %vm2097_vm6, %v2082_v4, %v4149_v45  ;;  %v1704_v45 = vrot.slane %v1702_v3, 1  ;;  %v2132_v28 = vsel %vm2130_vm7, %v2099_v61, %v4179_v12  ;;  %v4330_v12 = vcombine.low %v310_v29, %v4306_v41 }
  0xbd   : > { %v4292_v22 = vpop.permute.xlu1 %1856  ;;  %v2148_v6 = vsel %vm2130_vm7, %v2115_v1, %v4176_v27  ;;  %v2018_v27 = vsel %vm1998_vm3, %v3640_v31, %v4112_v17  ;;  %v1716_v31 = vrot.slane %v1714_v57, 1  ;;  %v4338_v17 = vld [vmem:[%s3596_s22 + $0xb0] ss:$0 sps:$4 sm:$0x11]   ;;  %v1955_v29 = vrot.slane %v4232_v11, 1 }
  0xbe   : > { %v4300_v48 = vpop.permute.xlu0 %1840  ;;  %v2181_v44 = vsel %vm2163_vm8, %v2148_v6, %v4214_v21  ;;  %v2002_v21 = vsel %vm1998_vm3, %v3646_v38, %v4094_v54  ;;  %v1930_v38 = vrot.slane %v3170_v63, 1  ;;  %v792_v54 = vshll.u32 %v4315_v49, 16 }
  0xbf   : > { %1590 = vrot.lane.b32.xlu1 %v4199_v36, %s3544_s28  ;;  %v2165_v36 = vsel %vm2163_vm8, %v2132_v28, %v4228_v43  ;;  %v2214_v23 = vsel %vm2196_vm9, %v2181_v44, %v1855_v56  ;;  %v2051_v56 = vsel %vm2031_vm4, %v2018_v27, %v4074_v24  ;;  %v1705_v57 = vsel %vm620_vm1, %v1700_v5, %v1704_v45  ;;  %v312_v5 = vld [vmem:[%s3596_s22 + $0x54] sm:$0xf] }
  0xc0   : > { %1574 = vrot.lane.b32.xlu0 %v4219_v8, %s3544_s28  ;;  %v2198_v8 = vsel %vm2196_vm9, %v2165_v36, %v1839_v60  ;;  %v1931_v11 = vrot.slane %v4258_v35, 1  ;;  %v4355_v60 = vld [vmem:[%s3596_s22 + $0x50] ss:$0 sps:$4 sm:$0x11]   ;;  %v2084_v3 = vsel %vm2064_vm5, %v2051_v56, %v4135_v2  ;;  %v2035_v24 = vsel %vm2031_vm4, %v2002_v21, %v4087_v55  ;;  %v3035_v45 = vld [vmem:[%s3596_s22 + $0xb4] sm:$0xe] }
  0xc1   : > { %v1983_v34 = vpop.permute.xlu1 %1982  ;;  %v696_v63 = vshll.u32 %v4330_v12, 16  ;;  %v2068_v35 = vsel %vm2064_vm5, %v2035_v24, %v4139_v32  ;;  %v2117_v2 = vsel %vm2097_vm6, %v2084_v3, %v4163_v0  ;;  %v1717_v55 = vsel %vm620_vm1, %v1712_v14, %v1716_v31  ;;  %v3027_v28 = vld [vmem:[%s3596_s22 + $0x54] sm:$0xe] }
  0xc2   : > { %v1967_v58 = vpop.permute.xlu0 %1966  ;;  %v2247_v59 = vsel %vm2229_vm10, %v2214_v23, %v1983_v34  ;;  %v797_v4 = vshll.u32 %v4338_v17, 16  ;;  %v2101_v1 = vsel %vm2097_vm6, %v2068_v35, %v4169_v9  ;;  %v2150_v10 = vsel %vm2130_vm7, %v2117_v2, %v4192_v7 }
  0xc3   : > { %1592 = vrot.lane.b32.xlu1 %v4222_v47, %s3544_s28  ;;  %v2231_v43 = vsel %vm2229_vm10, %v2198_v8, %v1967_v58  ;;  %3311 = vmatprep.mubr.msk.bf16.mxu1 %vm2282_vm11, %v2247_v59  ;;  %v1813_v47 = vsel %vm620_vm1, %v1808_v37, %v1812_v52  ;;  %v4379_v37 = vld [vmem:[%s3596_s22 + $0x58] sm:$0xf]  ;;  %v794_v32 = vrot.slane %v792_v54, 1  ;;  %v694_v0 = vshrl.u32 %v4330_v12, 16 }
  0xc4   : > { %1576 = vrot.lane.b32.xlu0 %v4241_v13, %s3544_s28  ;;  %3295 = vmatprep.mubr.msk.bf16.mxu0 %vm2282_vm11, %v2231_v43  ;;  %v790_v13 = vshrl.u32 %v4315_v49, 16  ;;  %v2134_v61 = vsel %vm2130_vm7, %v2101_v1, %v4196_v15  ;;  %v2183_v6 = vsel %vm2163_vm8, %v2150_v10, %v4243_v40  ;;  %v701_v9 = vshll.u32 %v4355_v60, 16  ;;  %v4418_v8 = vld [vmem:[%s3596_s22 + $0xbc] ss:$0 sps:$4 sm:$0x11]  }
  0xc5   : > { %v4361_v19 = vpop.permute.xlu1 %833  ;;  %v4396_v44 = vcombine.low %v328_v33, %v4367_v51  ;;  %v2167_v7 = vsel %vm2163_vm8, %v2134_v61, %v4248_v62  ;;  %v698_v15 = vrot.slane %v696_v63, 1  ;;  %v4403_v40 = vcombine.low %v312_v5, %v4379_v37  ;;  %v4425_v43 = vld [vmem:[%s3596_s22 + $0x5c] ss:$0 sps:$4 sm:$0x11]  }
  0xc6   : > { %v4373_v20 = vpop.permute.xlu0 %817  ;;  %v2200_v14 = vsel %vm2196_vm9, %v2167_v7, %v4300_v48  ;;  %v3179_v23 = vcombine.low %v3035_v45, %v4206_v39  ;;  %v3171_v62 = vcombine.low %v3027_v28, %v4226_v30  ;;  %v795_v48 = vor.u32 %v794_v32, %v790_v13  ;;  %v361_v28 = vld [vmem:[%s3596_s22 + $0xb4] sm:$0xe] }
  0xc7   : > { %1862 = vrot.lane.b32.xlu1 %v1801_v18, %s3545_s29  ;;  %v2216_v18 = vsel %vm2196_vm9, %v2183_v6, %v4292_v22  ;;  %v1956_v22 = vsel %vm893_vm0, %v4294_v26, %v1955_v29  ;;  %v799_v21 = vrot.slane %v797_v4, 1  ;;  %v804_v39 = vshll.u32 %v4396_v44, 16  ;;  %v353_v7 = vld [vmem:[%s3596_s22 + $0x54] sm:$0xe] }
  0xc8   : > { %1846 = vrot.lane.b32.xlu0 %v1705_v57, %s3545_s29  ;;  %v1932_v58 = vsel %vm893_vm0, %v1930_v38, %v1931_v11  ;;  %v699_v59 = vor.u32 %v698_v15, %v694_v0  ;;  %v703_v31 = vrot.slane %v701_v9, 1  ;;  %v708_v54 = vshll.u32 %v4403_v40, 16 }
  0xc9   : > { %v1985_v52 = vpop.permute.xlu1 %1984  ;;  %v1957_v26 = vrot.slane %v3179_v23, 1  ;;  %v1958_v29 = vrot.slane %v4268_v16, 1  ;;  %v1933_v57 = vrot.slane %v3171_v62, 1  ;;  %v800_v38 = vsel %vm620_vm1, %v795_v48, %v799_v21  ;;  %v2938_v62 = vld [vmem:[%s3596_s22 + $0xb4] sm:$0xf] }
  0xca   : > { %v2249_v27 = vsel %vm2229_vm10, %v2216_v18, %v1985_v52  ;;  %v1969_v36 = vpop.permute.xlu0 %1968  ;;  %v802_v11 = vshrl.u32 %v4396_v44, 16  ;;  %v806_v3 = vrot.slane %v804_v39, 1  ;;  %v809_v24 = vshll.u32 %v4418_v8, 16  ;;  %v2922_v48 = vld [vmem:[%s3596_s22 + $0x54] sm:$0xf] }
  0xcb   : > { %v2233_v34 = vsel %vm2229_vm10, %v2200_v14, %v1969_v36  ;;  %1864 = vrot.lane.b32.xlu1 %v1813_v47, %s3545_s29  ;;  %3312 = vmatmul.mubr.msk.bf16.vlgmr.msra.gmra.mxu1 %vm2282_vm11, %v2249_v27  ;;  %v1934_v47 = vrot.slane %v4276_v46, 1  ;;  %v704_v63 = vsel %vm620_vm1, %v699_v59, %v703_v31  ;;  %v706_v33 = vshrl.u32 %v4403_v40, 16  ;;  %v360_v46 = vld [vmem:[%s3596_s22 + $0xa8] sm:$0xe] }
  0xcc   : > { %1848 = vrot.lane.b32.xlu0 %v1717_v55, %s3545_s29  ;;  %3296 = vmatmul.mubr.msk.bf16.vlgmr.msra.gmra.mxu0 %vm2282_vm11, %v2233_v34  ;;  %v710_v35 = vrot.slane %v708_v54, 1  ;;  %v713_v16 = vshll.u32 %v4425_v43, 16  ;;  %v352_v55 = vld [vmem:[%s3596_s22 + $0x48] sm:$0xe]  ;;  %v1959_v4 = vsel %vm893_vm0, %v1957_v26, %v1958_v29  ;;  %v807_v5 = vor.u32 %v806_v3, %v802_v11  ;;  %v4470_v34 = vld [vmem:[%s3596_s22 + $0xb8] sm:$0xf] }
  0xcd   : > { %v4421_v30 = vpop.permute.xlu1 %835  ;;  %v811_v1 = vrot.slane %v809_v24, 1  ;;  %v3084_v10 = vcombine.low %v360_v46, %v4288_v42  ;;  %v1935_v0 = vsel %vm893_vm0, %v1933_v57, %v1934_v47  ;;  %v3076_v45 = vcombine.low %v352_v55, %v4306_v41  ;;  %v2940_v26 = vld [vmem:[%s3596_s22 + $0xc0] sm:$0xf]  ;;  %v4490_v29 = vld [vmem:[%s3596_s22 + $0xc4] sm:$0xf] }
  0xce   : > { %v4428_v56 = vpop.permute.xlu0 %819  ;;  %v711_v61 = vor.u32 %v710_v35, %v706_v33  ;;  %v715_v6 = vrot.slane %v713_v16, 1  ;;  %v937_v52 = vrot.slane %v4338_v17, 1  ;;  %v3085_v15 = vcombine.low %v361_v28, %v4367_v51  ;;  %v4476_v17 = vld [vmem:[%s3596_s22 + $0x58] sm:$0xf]  ;;  %v2924_v47 = vld [vmem:[%s3596_s22 + $0x60] sm:$0xf] }
  0xcf   : > { %1990 = vrot.lane.b32.xlu1 %v1956_v22, %s3546_s30  ;;  %v812_v42 = vsel %vm620_vm1, %v807_v5, %v811_v1  ;;  %v936_v18 = vrot.slane %v3084_v10, 1  ;;  %v912_v27 = vrot.slane %v3076_v45, 1  ;;  %v913_v36 = vrot.slane %v4355_v60, 1  ;;  %v4506_v24 = vld [vmem:[%s3596_s22 + $0x5c] ss:$0 sps:$4 sm:$0x11]  }
  0xd0   : > { %1974 = vrot.lane.b32.xlu0 %v1932_v58, %s3546_s30  ;;  %v716_v41 = vsel %vm620_vm1, %v711_v61, %v715_v6  ;;  %v3077_v23 = vcombine.low %v353_v7, %v4379_v37  ;;  %v939_v51 = vrot.slane %v3085_v15, 1  ;;  %v940_v37 = vrot.slane %v4418_v8, 1  ;;  %v4500_v8 = vld [vmem:[%s3596_s22 + $0xbc] ss:$0 sps:$4 sm:$0x11]  }
  0xd1   : > { %v4437_v13 = vpop.permute.xlu1 %962  ;;  %v938_v60 = vsel %vm893_vm0, %v936_v18, %v937_v52  ;;  %v3100_v21 = vcombine.low %v2938_v62, %v4470_v34  ;;  %v914_v58 = vsel %vm893_vm0, %v912_v27, %v913_v36  ;;  %v916_v31 = vrot.slane %v4425_v43, 1  ;;  %v4519_v10 = vld [vmem:[%s3596_s22 + $0xc8] ss:$0 sps:$4 sm:$0x11]  }
  0xd2   : > { %v4443_v2 = vpop.permute.xlu0 %946  ;;  %v915_v59 = vrot.slane %v3077_v23, 1  ;;  %v3092_v54 = vcombine.low %v2922_v48, %v4476_v17  ;;  %v941_v11 = vsel %vm893_vm0, %v939_v51, %v940_v37  ;;  %v3101_v43 = vcombine.low %v2940_v26, %v4490_v29  ;;  %v4524_v28 = vld [vmem:[%s3596_s22 + $0x68] ss:$0 sps:$4 sm:$0x11]   ;;  %v2972_v37 = vld [vmem:[%s3596_s22 + $0xb4] sm:$0xe] }
  0xd3   : > { %841 = vrot.lane.b32.xlu1 %v800_v38, %s3541_s25  ;;  %v4496_v38 = vld [vmem:[%s3596_s22 + $0x64] sm:$0xf]  ;;  %v1305_v3 = vshll.u32 %v3100_v21, 16  ;;  %v1303_v55 = vshrl.u32 %v3100_v21, 16  ;;  %v1214_v1 = vshll.u32 %v4506_v24, 16  ;;  %v1322_v36 = vshll.u32 %v4519_v10, 16 }
  0xd4   : > { %825 = vrot.lane.b32.xlu0 %v704_v63, %s3541_s25  ;;  %v917_v33 = vsel %vm893_vm0, %v915_v59, %v916_v31  ;;  %v3093_v35 = vcombine.low %v2924_v47, %v4496_v38  ;;  %v1209_v16 = vshll.u32 %v3092_v54, 16  ;;  %v1207_v6 = vshrl.u32 %v3092_v54, 16 }
  0xd5   : > { %v4450_v32 = vpop.permute.xlu1 %964  ;;  %v1307_v5 = vrot.slane %v1305_v3, 1  ;;  %v1315_v52 = vshrl.u32 %v3101_v43, 16  ;;  %v1226_v51 = vshll.u32 %v4524_v28, 16  ;;  %v3132_v26 = vcombine.low %v2972_v37, %v4470_v34 }
  0xd6   : > { %v4455_v9 = vpop.permute.xlu0 %948  ;;  %v1211_v45 = vrot.slane %v1209_v16, 1  ;;  %v1221_v7 = vshll.u32 %v3093_v35, 16  ;;  %v1219_v48 = vshrl.u32 %v3093_v35, 16 }
  0xd7   : > { %1992 = vrot.lane.b32.xlu1 %v1959_v4, %s3546_s30  ;;  %v1310_v4 = vshll.u32 %v4500_v8, 16  ;;  %v1308_v15 = vor.u32 %v1307_v5, %v1303_v55  ;;  %v2973_v55 = vld [vmem:[%s3596_s22 + $0xc0] sm:$0xe]  ;;  %v1449_v5 = vrot.slane %v4500_v8, 1 }
  0xd8   : > { %1976 = vrot.lane.b32.xlu0 %v1935_v0, %s3546_s30  ;;  %v1317_v0 = vshll.u32 %v3101_v43, 16  ;;  %v1212_v62 = vor.u32 %v1211_v45, %v1207_v6 }
  0xd9   : > { %v4463_v14 = vpop.permute.xlu1 %1074  ;;  %v1312_v18 = vrot.slane %v1310_v4, 1  ;;  %v1448_v4 = vrot.slane %v3132_v26, 1 }
  0xda   : > { %v4472_v22 = vpop.permute.xlu0 %1058  ;;  %v1319_v27 = vrot.slane %v1317_v0, 1  ;;  %v4557_v0 = vld [vmem:[%s3596_s22 + $0xc4] sm:$0xf] }
  0xdb   : > { %843 = vrot.lane.b32.xlu1 %v812_v42, %s3541_s25  ;;  %v1313_v59 = vsel %vm620_vm1, %v1308_v15, %v1312_v18  ;;  %v1425_v18 = vrot.slane %v4506_v24, 1  ;;  %v2986_v15 = vld [vmem:[%s3596_s22 + $0x60] sm:$0xf]  ;;  %v1450_v24 = vsel %vm893_vm0, %v1448_v4, %v1449_v5  ;;  %v4608_v4 = vld [vmem:[%s3596_s22 + $0xd4] ss:$0 sps:$4 sm:$0x11]  }
  0xdc   : > { %827 = vrot.lane.b32.xlu0 %v716_v41, %s3541_s25  ;;  %v1216_v41 = vrot.slane %v1214_v1, 1  ;;  %v1320_v31 = vor.u32 %v1319_v27, %v1315_v52  ;;  %v3133_v1 = vcombine.low %v2973_v55, %v4490_v29  ;;  %v3004_v27 = vld [vmem:[%s3596_s22 + $0xcc] sm:$0xf] }
  0xdd   : > { %v4483_v39 = vpop.permute.xlu1 %1076 }
  0xde   : > { %v4492_v57 = vpop.permute.xlu0 %1060 }
  0xdf   : > { %970 = vrot.lane.b32.xlu1 %v938_v60, %s3540_s24  ;;  %v1223_v60 = vrot.slane %v1221_v7, 1 }
  0xe0   : > { %954 = vrot.lane.b32.xlu0 %v914_v58, %s3540_s24  ;;  %v2964_v58 = vld [vmem:[%s3596_s22 + $0x54] sm:$0xe] }
  0xe1   : > { %v4508_v63 = vpop.permute.xlu1 %1346  ;;  %v1224_v3 = vor.u32 %v1223_v60, %v1219_v48  ;;  %v3124_v16 = vcombine.low %v2964_v58, %v4476_v17  ;;  %v3002_v17 = vld [vmem:[%s3596_s22 + $0xc0] sm:$0xf]  ;;  %v4581_v60 = vld [vmem:[%s3596_s22 + $0xc8] ss:$0 sps:$4 sm:$0x11]  }
  0xe2   : > { %v4512_v46 = vpop.permute.xlu0 %1330  ;;  %v3148_v29 = vcombine.low %v3002_v17, %v4557_v0 }
  0xe3   : > { %972 = vrot.lane.b32.xlu1 %v941_v11, %s3540_s24  ;;  %v1217_v11 = vsel %vm620_vm1, %v1212_v62, %v1216_v41  ;;  %v1424_v7 = vrot.slane %v3124_v16, 1  ;;  %v4566_v41 = vld [vmem:[%s3596_s22 + $0x64] sm:$0xf]  ;;  %v1452_v62 = vrot.slane %v4519_v10, 1  ;;  %v1822_v16 = vshll.u32 %v4581_v60, 16 }
  0xe4   : > { %956 = vrot.lane.b32.xlu0 %v917_v33, %s3540_s24  ;;  %v1228_v33 = vrot.slane %v1226_v51, 1  ;;  %v3140_v48 = vcombine.low %v2986_v15, %v4566_v41  ;;  %v4597_v10 = vld [vmem:[%s3596_s22 + $0x68] ss:$0 sps:$4 sm:$0x11]  }
  0xe5   : > { %v4521_v61 = vpop.permute.xlu1 %1348  ;;  %v1426_v37 = vsel %vm893_vm0, %v1424_v7, %v1425_v18  ;;  %v1726_v17 = vshll.u32 %v4597_v10, 16  ;;  %v2020_v7 = vsel %vm1998_vm3, %v3781_v50, %v4361_v19 }
  0xe6   : > { %v4526_v42 = vpop.permute.xlu0 %1332  ;;  %v1229_v45 = vsel %vm620_vm1, %v1224_v3, %v1228_v33  ;;  %v1817_v3 = vshll.u32 %v3148_v29, 16 }
  0xe7   : > { %1082 = vrot.lane.b32.xlu1 %v3100_v21, %s3539_s23 }
  0xe8   : > { %1066 = vrot.lane.b32.xlu0 %v3092_v54, %s3539_s23  ;;  %v1324_v54 = vrot.slane %v1322_v36, 1  ;;  %v4574_v36 = vld [vmem:[%s3596_s22 + $0xd0] sm:$0xf]  ;;  %v1819_v18 = vrot.slane %v1817_v3, 1  ;;  %v1728_v3 = vrot.slane %v1726_v17, 1 }
  0xe9   : > { %v4531_v23 = vpop.permute.xlu1 %1474  ;;  %v4591_v26 = vcombine.low %v3004_v27, %v4574_v36  ;;  %v2004_v27 = vsel %vm1998_vm3, %v3784_v53, %v4373_v20  ;;  %v1834_v53 = vshll.u32 %v4608_v4, 16 }
  0xea   : > { %v4535_v21 = vpop.permute.xlu0 %1458  ;;  %v1325_v34 = vsel %vm620_vm1, %v1320_v31, %v1324_v54  ;;  %v2988_v31 = vld [vmem:[%s3596_s22 + $0x6c] sm:$0xf]  ;;  %v2037_v50 = vsel %vm2031_vm4, %v2004_v27, %v4443_v2 }
  0xeb   : > { %1084 = vrot.lane.b32.xlu1 %v3101_v43, %s3539_s23  ;;  %v1827_v15 = vshrl.u32 %v4591_v26, 16 }
  0xec   : > { %1068 = vrot.lane.b32.xlu0 %v3093_v35, %s3539_s23  ;;  %v2965_v35 = vld [vmem:[%s3596_s22 + $0x60] sm:$0xe] }
  0xed   : > { %v4542_v47 = vpop.permute.xlu1 %1476  ;;  %v3125_v52 = vcombine.low %v2965_v35, %v4496_v38  ;;  %v1451_v38 = vrot.slane %v3133_v1, 1  ;;  %v1815_v1 = vshrl.u32 %v3148_v29, 16 }
  0xee   : > { %v4547_v43 = vpop.permute.xlu0 %1460 }
  0xef   : > { %1354 = vrot.lane.b32.xlu1 %v1313_v59, %s3542_s26  ;;  %v1427_v58 = vrot.slane %v3125_v52, 1  ;;  %v1428_v59 = vrot.slane %v4524_v28, 1  ;;  %v1453_v33 = vsel %vm893_vm0, %v1451_v38, %v1452_v62  ;;  %v1721_v28 = vshll.u32 %v3140_v48, 16 }
  0xf0   : > { %1338 = vrot.lane.b32.xlu0 %v1217_v11, %s3542_s26  ;;  %v4594_v11 = vld [vmem:[%s3596_s22 + $0x70] sm:$0xf]  ;;  %v1719_v52 = vshrl.u32 %v3140_v48, 16  ;;  %v1824_v38 = vrot.slane %v1822_v16, 1  ;;  %v1820_v16 = vor.u32 %v1819_v18, %v1815_v1 }
  0xf1   : > { %v4559_v6 = vpop.permute.xlu1 %1586  ;;  %v1429_v35 = vsel %vm893_vm0, %v1427_v58, %v1428_v59  ;;  %v1723_v62 = vrot.slane %v1721_v28, 1 }
  0xf2   : > { %v4568_v8 = vpop.permute.xlu0 %1570 }
  0xf3   : > { %1356 = vrot.lane.b32.xlu1 %v1325_v34, %s3542_s26  ;;  %v4605_v34 = vcombine.low %v2988_v31, %v4594_v11  ;;  %v1724_v17 = vor.u32 %v1723_v62, %v1719_v52  ;;  %v2022_v52 = vsel %vm1998_vm3, %v3819_v25, %v4421_v30 }
  0xf4   : > { %1340 = vrot.lane.b32.xlu0 %v1229_v45, %s3542_s26  ;;  %v1829_v45 = vshll.u32 %v4591_v26, 16 }
  0xf5   : > { %v4583_v51 = vpop.permute.xlu1 %1588  ;;  %v1733_v20 = vshll.u32 %v4605_v34, 16  ;;  %v1731_v28 = vshrl.u32 %v4605_v34, 16  ;;  %v1729_v25 = vsel %vm620_vm1, %v1724_v17, %v1728_v3 }
  0xf6   : > { %v4588_v54 = vpop.permute.xlu0 %1572 }
  0xf7   : > { %1482 = vrot.lane.b32.xlu1 %v1450_v24, %s3543_s27  ;;  %v2053_v24 = vsel %vm2031_vm4, %v2020_v7, %v4437_v13  ;;  %v2070_v13 = vsel %vm2064_vm5, %v2037_v50, %v4472_v22  ;;  %v1735_v7 = vrot.slane %v1733_v20, 1 }
  0xf8   : > { %1466 = vrot.lane.b32.xlu0 %v1426_v37, %s3543_s27  ;;  %v4624_v37 = vld [vmem:[%s3596_s22 + $0x74] ss:$0 sps:$4 sm:$0x11]   ;;  %v2086_v19 = vsel %vm2064_vm5, %v2053_v24, %v4463_v14  ;;  %v2103_v2 = vsel %vm2097_vm6, %v2070_v13, %v4512_v46 }
  0xf9   : > { %v1859_v55 = vpop.permute.xlu1 %1858  ;;  %v2119_v59 = vsel %vm2097_vm6, %v2086_v19, %v4508_v63  ;;  %v2136_v22 = vsel %vm2130_vm7, %v2103_v2, %v4535_v21  ;;  %v1738_v46 = vshll.u32 %v4624_v37, 16  ;;  %v3029_v19 = vld [vmem:[%s3596_s22 + $0x6c] sm:$0xe] }
  0xfa   : > { %v1843_v5 = vpop.permute.xlu0 %1842  ;;  %v2152_v14 = vsel %vm2130_vm7, %v2119_v59, %v4531_v23  ;;  %v2169_v23 = vsel %vm2163_vm8, %v2136_v22, %v4568_v8  ;;  %v1940_v22 = vrot.slane %v4624_v37, 1 }
  0xfb   : > { %1484 = vrot.lane.b32.xlu1 %v1453_v33, %s3543_s27  ;;  %v1831_v33 = vrot.slane %v1829_v45, 1  ;;  %v2185_v63 = vsel %vm2163_vm8, %v2152_v14, %v4559_v6  ;;  %v1836_v45 = vrot.slane %v1834_v53, 1  ;;  %v2202_v18 = vsel %vm2196_vm9, %v2169_v23, %v1843_v5  ;;  %v4980_v5 = vld [vmem:[#allocation2_spill] sm:$0xff] }
  0xfc   : > { %1468 = vrot.lane.b32.xlu0 %v1429_v35, %s3543_s27  ;;  %v3036_v35 = vld [vmem:[%s3596_s22 + $0xc0] sm:$0xe]  ;;  %v1740_v30 = vrot.slane %v1738_v46, 1 }
  0xfd   : > { %v4630_v58 = vpop.permute.xlu1 %1860  ;;  %v1832_v24 = vor.u32 %v1831_v33, %v1827_v15  ;;  %v3180_v6 = vcombine.low %v3036_v35, %v4557_v0  ;;  %v2006_v0 = vsel %vm1998_vm3, %v4980_v5, %v4428_v56  ;;  %v2055_v15 = vsel %vm2031_vm4, %v2022_v52, %v4450_v32  ;;  %v3037_v32 = vld [vmem:[%s3596_s22 + $0xcc] sm:$0xe] }
  0xfe   : > { %v4638_v31 = vpop.permute.xlu0 %1844  ;;  %v1736_v56 = vor.u32 %v1735_v7, %v1731_v28  ;;  %v3181_v33 = vcombine.low %v3037_v32, %v4574_v36 }
  0xff   : > { %1594 = vrot.lane.b32.xlu1 %v3148_v29, %s3544_s28  ;;  %v2218_v29 = vsel %vm2196_vm9, %v2185_v63, %v1859_v55  ;;  %v1825_v55 = vsel %vm620_vm1, %v1820_v16, %v1824_v38  ;;  %v2088_v38 = vsel %vm2064_vm5, %v2055_v15, %v4483_v39  ;;  %v1960_v13 = vrot.slane %v3180_v6, 1 }
 0x100   : > { %1578 = vrot.lane.b32.xlu0 %v3140_v48, %s3544_s28  ;;  %v3028_v48 = vld [vmem:[%s3596_s22 + $0x60] sm:$0xe]  ;;  %v2121_v53 = vsel %vm2097_vm6, %v2088_v38, %v4521_v61  ;;  %v4981_v38 = vld [vmem:[#allocation3_spill] sm:$0xff] }
 0x101   : > { %v1987_v1 = vpop.permute.xlu1 %1986  ;;  %v3172_v50 = vcombine.low %v3028_v48, %v4566_v41  ;;  %v2154_v59 = vsel %vm2130_vm7, %v2121_v53, %v4542_v47  ;;  %v1961_v41 = vrot.slane %v4581_v60, 1 }
 0x102   : > { %v2251_v21 = vsel %vm2229_vm10, %v2218_v29, %v1987_v1  ;;  %v1971_v27 = vpop.permute.xlu0 %1970  ;;  %v2187_v3 = vsel %vm2163_vm8, %v2154_v59, %v4583_v51 }
 0x103   : > { %v2235_v8 = vsel %vm2229_vm10, %v2202_v18, %v1971_v27  ;;  %1596 = vrot.lane.b32.xlu1 %v4591_v26, %s3544_s28  ;;  %3315 = vmatprep.mubr.msk.bf16.mxu1 %vm2282_vm11, %v2251_v21  ;;  %v2039_v26 = vsel %vm2031_vm4, %v2006_v0, %v4455_v9  ;;  %v1837_v9 = vsel %vm620_vm1, %v1832_v24, %v1836_v45  ;;  %v1936_v14 = vrot.slane %v3172_v50, 1  ;;  %v4982_v50 = vld [vmem:[#allocation4_spill] sm:$0xff] }
 0x104   : > { %1580 = vrot.lane.b32.xlu0 %v4605_v34, %s3544_s28  ;;  %3299 = vmatprep.mubr.msk.bf16.mxu0 %vm2282_vm11, %v2235_v8  ;;  %v2072_v34 = vsel %vm2064_vm5, %v2039_v26, %v4492_v57  ;;  %v1937_v57 = vrot.slane %v4597_v10, 1  ;;  %v2220_v60 = vsel %vm2196_vm9, %v2187_v3, %v4630_v58  ;;  %v1741_v10 = vsel %vm620_vm1, %v1736_v56, %v1740_v30 }
 0x105   : > { %v4681_v62 = vpop.permute.xlu1 %837  ;;  %v2105_v39 = vsel %vm2097_vm6, %v2072_v34, %v4526_v42  ;;  %v3173_v42 = vcombine.low %v3029_v19, %v4594_v11  ;;  %v1963_v11 = vrot.slane %v3181_v33, 1  ;;  %v1964_v58 = vrot.slane %v4608_v4, 1 }
 0x106   : > { %v4690_v20 = vpop.permute.xlu0 %821  ;;  %v2138_v61 = vsel %vm2130_vm7, %v2105_v39, %v4547_v43  ;;  %v2024_v56 = vsel %vm1998_vm3, %v4981_v38, %v4681_v62 }
 0x107   : > { %1866 = vrot.lane.b32.xlu1 %v1825_v55, %s3545_s29  ;;  %v2171_v47 = vsel %vm2163_vm8, %v2138_v61, %v4588_v54  ;;  %v1962_v54 = vsel %vm893_vm0, %v1960_v13, %v1961_v41  ;;  %v1939_v35 = vrot.slane %v3173_v42, 1  ;;  %v1965_v17 = vsel %vm893_vm0, %v1963_v11, %v1964_v58 }
 0x108   : > { %1850 = vrot.lane.b32.xlu0 %v1729_v25, %s3545_s29  ;;  %v2204_v43 = vsel %vm2196_vm9, %v2171_v47, %v4638_v31  ;;  %v1938_v31 = vsel %vm893_vm0, %v1936_v14, %v1937_v57  ;;  %v2008_v32 = vsel %vm1998_vm3, %v4982_v50, %v4690_v20 }
 0x109   : > { %v1989_v2 = vpop.permute.xlu1 %1988  ;;  %v1941_v23 = vsel %vm893_vm0, %v1939_v35, %v1940_v22 }
 0x10a   : > { %v2253_v51 = vsel %vm2229_vm10, %v2220_v60, %v1989_v2  ;;  %v1973_v16 = vpop.permute.xlu0 %1972  ;;  %v4983_v2 = vld [vmem:[#allocation5_spill] sm:$0xff] }
 0x10b   : > { %v2237_v36 = vsel %vm2229_vm10, %v2204_v43, %v1973_v16  ;;  %1868 = vrot.lane.b32.xlu1 %v1837_v9, %s3545_s29  ;;  %3316 = vmatmul.mubr.msk.bf16.gmra.mxu1 %vm2282_vm11, %v2253_v51  ;;  %v4984_v43 = vld [vmem:[#allocation6_spill] sm:$0xff] }
 0x10c   : > { %1852 = vrot.lane.b32.xlu0 %v1741_v10, %s3545_s29  ;;  %3300 = vmatmul.mubr.msk.bf16.gmra.mxu0 %vm2282_vm11, %v2237_v36 }
 0x10d   : > { %v840_v28 = vpop.permute.xlu1 %839 }
 0x10e   : > { %v824_v63 = vpop.permute.xlu0 %823  ;;  %v2026_v10 = vsel %vm1998_vm3, %v4983_v2, %v840_v28 }
 0x10f   : > { %1994 = vrot.lane.b32.xlu1 %v1962_v54, %s3546_s30  ;;  %v2010_v51 = vsel %vm1998_vm3, %v4984_v43, %v824_v63 }
 0x110   : > { %1978 = vrot.lane.b32.xlu0 %v1938_v31, %s3546_s30 }
 0x111   : > { %v967_v46 = vpop.permute.xlu1 %966 }
 0x112   : > { %v951_v29 = vpop.permute.xlu0 %950  ;;  %v2057_v19 = vsel %vm2031_vm4, %v2024_v56, %v967_v46 }
 0x113   : > { %1996 = vrot.lane.b32.xlu1 %v1965_v17, %s3546_s30  ;;  %v2041_v34 = vsel %vm2031_vm4, %v2008_v32, %v951_v29 }
 0x114   : > { %1980 = vrot.lane.b32.xlu0 %v1941_v23, %s3546_s30 }
 0x115   : > { %v969_v4 = vpop.permute.xlu1 %968 }
 0x116   : > { %v953_v1 = vpop.permute.xlu0 %952  ;;  %v2059_v16 = vsel %vm2031_vm4, %v2026_v10, %v969_v4 }
 0x117   : > { %v2043_v36 = vsel %vm2031_vm4, %v2010_v51, %v953_v1 }
 0x119   : > { %v1079_v45 = vpop.permute.xlu1 %1078 }
 0x11a   : > { %v1063_v7 = vpop.permute.xlu0 %1062  ;;  %v2090_v53 = vsel %vm2064_vm5, %v2057_v19, %v1079_v45 }
 0x11b   : > { %v2074_v13 = vsel %vm2064_vm5, %v2041_v34, %v1063_v7 }
 0x11d   : > { %v1081_v37 = vpop.permute.xlu1 %1080 }
 0x11e   : > { %v1065_v18 = vpop.permute.xlu0 %1064  ;;  %v2092_v54 = vsel %vm2064_vm5, %v2059_v16, %v1081_v37 }
 0x11f   : > { %v2076_v58 = vsel %vm2064_vm5, %v2043_v36, %v1065_v18 }
 0x121   : > { %v1351_v21 = vpop.permute.xlu1 %1350 }
 0x122   : > { %v1335_v27 = vpop.permute.xlu0 %1334  ;;  %v2123_v39 = vsel %vm2097_vm6, %v2090_v53, %v1351_v21 }
 0x123   : > { %v2107_v41 = vsel %vm2097_vm6, %v2074_v13, %v1335_v27 }
 0x125   : > { %v1353_v24 = vpop.permute.xlu1 %1352 }
 0x126   : > { %v1337_v6 = vpop.permute.xlu0 %1336  ;;  %v2125_v28 = vsel %vm2097_vm6, %v2092_v54, %v1353_v24 }
 0x127   : > { %v2109_v35 = vsel %vm2097_vm6, %v2076_v58, %v1337_v6 }
 0x129   : > { %v1479_v48 = vpop.permute.xlu1 %1478 }
 0x12a   : > { %v1463_v52 = vpop.permute.xlu0 %1462  ;;  %v2156_v62 = vsel %vm2130_vm7, %v2123_v39, %v1479_v48 }
 0x12b   : > { %v2140_v57 = vsel %vm2130_vm7, %v2107_v41, %v1463_v52 }
 0x12d   : > { %v1481_v8 = vpop.permute.xlu1 %1480 }
 0x12e   : > { %v1465_v55 = vpop.permute.xlu0 %1464  ;;  %v2158_v22 = vsel %vm2130_vm7, %v2125_v28, %v1481_v8 }
 0x12f   : > { %v2142_v63 = vsel %vm2130_vm7, %v2109_v35, %v1465_v55 }
 0x131   : > { %v1591_v5 = vpop.permute.xlu1 %1590 }
 0x132   : > { %v1575_v0 = vpop.permute.xlu0 %1574  ;;  %v2189_v20 = vsel %vm2163_vm8, %v2156_v62, %v1591_v5 }
 0x133   : > { %v2173_v61 = vsel %vm2163_vm8, %v2140_v57, %v1575_v0 }
 0x135   : > { %v1593_v15 = vpop.permute.xlu1 %1592 }
 0x136   : > { %v1577_v25 = vpop.permute.xlu0 %1576  ;;  %v2191_v17 = vsel %vm2163_vm8, %v2158_v22, %v1593_v15 }
 0x137   : > { %v2175_v46 = vsel %vm2163_vm8, %v2142_v63, %v1577_v25 }
 0x139   : > { %v1863_v30 = vpop.permute.xlu1 %1862 }
 0x13a   : > { %v1847_v26 = vpop.permute.xlu0 %1846  ;;  %v2222_v3 = vsel %vm2196_vm9, %v2189_v20, %v1863_v30 }
 0x13b   : > { %v2206_v42 = vsel %vm2196_vm9, %v2173_v61, %v1847_v26 }
 0x13d   : > { %v1865_v9 = vpop.permute.xlu1 %1864 }
 0x13e   : > { %v1849_v59 = vpop.permute.xlu0 %1848  ;;  %v2224_v23 = vsel %vm2196_vm9, %v2191_v17, %v1865_v9 }
 0x13f   : > { %v2208_v4 = vsel %vm2196_vm9, %v2175_v46, %v1849_v59 }
 0x141   : > { %v1991_v33 = vpop.permute.xlu1 %1990 }
 0x142   : > { %v2255_v47 = vsel %vm2229_vm10, %v2222_v3, %v1991_v33  ;;  %v1975_v60 = vpop.permute.xlu0 %1974 }
 0x143   : > { %v2239_v14 = vsel %vm2229_vm10, %v2206_v42, %v1975_v60  ;;  %3319 = vmatprep.mubr.msk.bf16.mxu1 %vm2282_vm11, %v2255_v47 }
 0x144   : > { %3303 = vmatprep.mubr.msk.bf16.mxu0 %vm2282_vm11, %v2239_v14 }
 0x145   : > { %v842_v11 = vpop.permute.xlu1 %841 }
 0x146   : > { %v826_v31 = vpop.permute.xlu0 %825  ;;  %v2028_v13 = vsel %vm1998_vm3, %v4315_v49, %v842_v11 }
 0x147   : > { %v2012_v39 = vsel %vm1998_vm3, %v4330_v12, %v826_v31 }
 0x149   : > { %v1993_v29 = vpop.permute.xlu1 %1992 }
 0x14a   : > { %v2257_v1 = vsel %vm2229_vm10, %v2224_v23, %v1993_v29  ;;  %v1977_v45 = vpop.permute.xlu0 %1976 }
 0x14b   : > { %v2241_v7 = vsel %vm2229_vm10, %v2208_v4, %v1977_v45  ;;  %3320 = vmatmul.mubr.msk.bf16.gmra.mxu1 %vm2282_vm11, %v2257_v1  ;;  %v4815_v45 = vld [vmem:[%s4967_s2] ss:$0 sm:$0xff] }
 0x14c   : > { %3304 = vmatmul.mubr.msk.bf16.gmra.mxu0 %vm2282_vm11, %v2241_v7  ;;  %v4820_v7 = vld [vmem:[%s4968_s3] ss:$0 sm:$0xff] }
 0x14d   : > { %v844_v37 = vpop.permute.xlu1 %843 }
 0x14e   : > { %v828_v18 = vpop.permute.xlu0 %827  ;;  %v2030_v33 = vsel %vm1998_vm3, %v4396_v44, %v844_v37 }
 0x14f   : > { %v2014_v12 = vsel %vm1998_vm3, %v4403_v40, %v828_v18 }
 0x151   : > { %v971_v21 = vpop.permute.xlu1 %970 }
 0x152   : > { %v955_v27 = vpop.permute.xlu0 %954  ;;  %v2061_v59 = vsel %vm2031_vm4, %v2028_v13, %v971_v21 }
 0x153   : > { %v2045_v41 = vsel %vm2031_vm4, %v2012_v39, %v955_v27 }
 0x155   : > { %v973_v24 = vpop.permute.xlu1 %972 }
 0x156   : > { %v957_v6 = vpop.permute.xlu0 %956  ;;  %v2063_v47 = vsel %vm2031_vm4, %v2030_v33, %v973_v24 }
 0x157   : > { %v2047_v10 = vsel %vm2031_vm4, %v2014_v12, %v957_v6 }
 0x159   : > { %v1083_v48 = vpop.permute.xlu1 %1082 }
 0x15a   : > { %v1067_v52 = vpop.permute.xlu0 %1066  ;;  %v2094_v62 = vsel %vm2064_vm5, %v2061_v59, %v1083_v48 }
 0x15b   : > { %v2078_v20 = vsel %vm2064_vm5, %v2045_v41, %v1067_v52 }
 0x15d   : > { %v1085_v8 = vpop.permute.xlu1 %1084 }
 0x15e   : > { %v1069_v55 = vpop.permute.xlu0 %1068  ;;  %v2096_v14 = vsel %vm2064_vm5, %v2063_v47, %v1085_v8 }
 0x15f   : > { %v2080_v16 = vsel %vm2064_vm5, %v2047_v10, %v1069_v55 }
 0x161   : > { %v1355_v5 = vpop.permute.xlu1 %1354 }
 0x162   : > { %v1339_v0 = vpop.permute.xlu0 %1338  ;;  %v2127_v61 = vsel %vm2097_vm6, %v2094_v62, %v1355_v5 }
 0x163   : > { %v2111_v49 = vsel %vm2097_vm6, %v2078_v20, %v1339_v0 }
 0x165   : > { %v1357_v15 = vpop.permute.xlu1 %1356 }
 0x166   : > { %v1341_v25 = vpop.permute.xlu0 %1340  ;;  %v2129_v36 = vsel %vm2097_vm6, %v2096_v14, %v1357_v15 }
 0x167   : > { %v2113_v58 = vsel %vm2097_vm6, %v2080_v16, %v1341_v25 }
 0x169   : > { %v1483_v30 = vpop.permute.xlu1 %1482 }
 0x16a   : > { %v1467_v26 = vpop.permute.xlu0 %1466  ;;  %v2160_v42 = vsel %vm2130_vm7, %v2127_v61, %v1483_v30 }
 0x16b   : > { %v2144_v60 = vsel %vm2130_vm7, %v2111_v49, %v1467_v26 }
 0x16d   : > { %v1485_v38 = vpop.permute.xlu1 %1484 }
 0x16e   : > { %v1469_v56 = vpop.permute.xlu0 %1468  ;;  %v2162_v28 = vsel %vm2130_vm7, %v2129_v36, %v1485_v38 }
 0x16f   : > { %v2146_v35 = vsel %vm2130_vm7, %v2113_v58, %v1469_v56 }
 0x171   : > { %v1595_v50 = vpop.permute.xlu1 %1594 }
 0x172   : > { %v1579_v32 = vpop.permute.xlu0 %1578  ;;  %v2193_v2 = vsel %vm2163_vm8, %v2160_v42, %v1595_v50 }
 0x173   : > { %v2177_v43 = vsel %vm2163_vm8, %v2144_v60, %v1579_v32 }
 0x175   : > { %v1597_v19 = vpop.permute.xlu1 %1596 }
 0x176   : > { %v1581_v34 = vpop.permute.xlu0 %1580  ;;  %v2195_v22 = vsel %vm2163_vm8, %v2162_v28, %v1597_v19 }
 0x177   : > { %v2179_v63 = vsel %vm2163_vm8, %v2146_v35, %v1581_v34 }
 0x179   : > { %v1867_v53 = vpop.permute.xlu1 %1866 }
 0x17a   : > { %v1851_v9 = vpop.permute.xlu0 %1850  ;;  %v2226_v44 = vsel %vm2196_vm9, %v2193_v2, %v1867_v53 }
 0x17b   : > { %v2210_v40 = vsel %vm2196_vm9, %v2177_v43, %v1851_v9 }
 0x17d   : > { %v1869_v57 = vpop.permute.xlu1 %1868 }
 0x17e   : > { %v1853_v3 = vpop.permute.xlu0 %1852  ;;  %v2228_v17 = vsel %vm2196_vm9, %v2195_v22, %v1869_v57 }
 0x17f   : > { %v2212_v23 = vsel %vm2196_vm9, %v2179_v63, %v1853_v3 }
 0x181   : > { %v1995_v51 = vpop.permute.xlu1 %1994 }
 0x182   : > { %v2259_v54 = vsel %vm2229_vm10, %v2226_v44, %v1995_v51  ;;  %v1979_v11 = vpop.permute.xlu0 %1978 }
 0x183   : > { %v2243_v31 = vsel %vm2229_vm10, %v2210_v40, %v1979_v11  ;;  %3323 = vmatprep.mubr.msk.bf16.mxu1 %vm2282_vm11, %v2259_v54 }
 0x184   : > { %3307 = vmatprep.mubr.msk.bf16.mxu0 %vm2282_vm11, %v2243_v31 }
 0x185   : > { %v1997_v46 = vpop.permute.xlu1 %1996 }
 0x186   : > { %v2261_v29 = vsel %vm2229_vm10, %v2228_v17, %v1997_v46  ;;  %v1981_v4 = vpop.permute.xlu0 %1980 }
 0x187   : > { %v2245_v1 = vsel %vm2229_vm10, %v2212_v23, %v1981_v4  ;;  %3324 = vmatmul.mubr.msk.bf16.gmra.mxu1 %vm2282_vm11, %v2261_v29 }
 0x188   : > { %3308 = vmatmul.mubr.msk.bf16.gmra.mxu0 %vm2282_vm11, %v2245_v1 }
 0x18b   : > { %v3313_v37 = vpop.f32.mrf.mxu1 }
 0x18c   : > { %v3297_v18 = vpop.f32.mrf.mxu0  ;;  %v2505_v21 = vmul.f32 %v3313_v37, %v4815_v45 }
 0x18d   : > { %v2489_v27 = vmul.f32 %v3297_v18, %v4815_v45  ;;  %v2417_v24 = vpop.f32.mrf.mxu1 }
 0x18e   : > { %v2544_v6 = vadd.f32 %v4820_v7, %v2505_v21  ;;  %v2353_v48 = vpop.f32.mrf.mxu0  ;;  %v2503_v52 = vmul.f32 %v4815_v45, %v2417_v24 }
 0x18f   : > { %v2528_v8 = vadd.f32 %v4820_v7, %v2489_v27  ;;  %v2487_v55 = vmul.f32 %v4815_v45, %v2353_v48  ;;  %v3314_v5 = vpop.f32.mrf.mxu1 }
 0x190   : > { %v2576_v0 = vmax.f32 %v2544_v6, 0.0  ;;  %v2542_v15 = vadd.f32 %v4820_v7, %v2503_v52  ;;  %v3298_v25 = vpop.f32.mrf.mxu0  ;;  %v2506_v30 = vmul.f32 %v3314_v5, %v4815_v45 }
 0x191   : > { %v2560_v26 = vmax.f32 %v2528_v8, 0.0  ;;  %v2526_v38 = vadd.f32 %v4820_v7, %v2487_v55  ;;  %v2490_v56 = vmul.f32 %v3298_v25, %v4815_v45  ;;  %v2420_v50 = vpop.f32.mrf.mxu1 }
 0x192   : > { %v3256_v32 = vpack.c.bf16 %v2576_v0, %v2576_v0  ;;  %v2574_v19 = vmax.f32 %v2542_v15, 0.0  ;;  %v2545_v34 = vadd.f32 %v4820_v7, %v2506_v30  ;;  %v2356_v53 = vpop.f32.mrf.mxu0  ;;  %v2504_v9 = vmul.f32 %v4815_v45, %v2420_v50 }
 0x193   : > { %v3240_v13 = vpack.c.bf16 %v2560_v26, %v2560_v26  ;;  %v2558_v39 = vmax.f32 %v2526_v38, 0.0  ;;  %v2529_v59 = vadd.f32 %v4820_v7, %v2490_v56  ;;  %v2488_v41 = vmul.f32 %v4815_v45, %v2356_v53 }
 0x194   : > { %2737 = vst.msk [vmem:[%s4834_s15 + $0x48] sm:$0xf] %vm2718_vm12, %v3256_v32  ;;  %v3254_v62 = vpack.c.bf16 %v2574_v19, %v2574_v19  ;;  %v2577_v57 = vmax.f32 %v2545_v34, 0.0  ;;  %v2543_v20 = vadd.f32 %v4820_v7, %v2504_v9 }
 0x195   : > { %2721 = vst.msk [vmem:[%s4834_s15 + $0x8] sm:$0xf] %vm2718_vm12, %v3240_v13  ;;  %v3238_v61 = vpack.c.bf16 %v2558_v39, %v2558_v39  ;;  %v2561_v3 = vmax.f32 %v2529_v59, 0.0  ;;  %v2527_v33 = vadd.f32 %v4820_v7, %v2488_v41 }
 0x196   : > { %2735 = vst.msk [vmem:[%s4834_s15 + $0x40] sm:$0xf] %vm2718_vm12, %v3254_v62  ;;  %v3257_v49 = vpack.c.bf16 %v2577_v57, %v2577_v57  ;;  %v2575_v42 = vmax.f32 %v2543_v20, 0.0 }
 0x197   : > { %2719 = vst.msk [vmem:[%s4834_s15] sm:$0xf] %vm2718_vm12, %v3238_v61  ;;  %v3241_v12 = vpack.c.bf16 %v2561_v3, %v2561_v3  ;;  %v2559_v47 = vmax.f32 %v2527_v33, 0.0 }
 0x198   : > { %2738 = vst.msk [vmem:[%s4834_s15 + $0x4c] sm:$0xf] %vm2718_vm12, %v3257_v49  ;;  %v3255_v60 = vpack.c.bf16 %v2575_v42, %v2575_v42 }
 0x199   : > { %2722 = vst.msk [vmem:[%s4834_s15 + $0xc] sm:$0xf] %vm2718_vm12, %v3241_v12  ;;  %v3239_v2 = vpack.c.bf16 %v2559_v47, %v2559_v47 }
 0x19a   : > { %2736 = vst.msk [vmem:[%s4834_s15 + $0x44] sm:$0xf] %vm2718_vm12, %v3255_v60 }
 0x19b   : > { %2720 = vst.msk [vmem:[%s4834_s15 + $0x4] sm:$0xf] %vm2718_vm12, %v3239_v2 }
 0x1cb   : > { %v3317_v10 = vpop.f32.mrf.mxu1 }
 0x1cc   : > { %v3301_v14 = vpop.f32.mrf.mxu0  ;;  %v2509_v43 = vmul.f32 %v3317_v10, %v4815_v45 }
 0x1cd   : > { %v2493_v44 = vmul.f32 %v3301_v14, %v4815_v45  ;;  %v2433_v51 = vpop.f32.mrf.mxu1 }
 0x1ce   : > { %v2548_v16 = vadd.f32 %v4820_v7, %v2509_v43  ;;  %v2369_v36 = vpop.f32.mrf.mxu0  ;;  %v2507_v40 = vmul.f32 %v4815_v45, %v2433_v51 }
 0x1cf   : > { %v2532_v54 = vadd.f32 %v4820_v7, %v2493_v44  ;;  %v2491_v11 = vmul.f32 %v4815_v45, %v2369_v36  ;;  %v3318_v58 = vpop.f32.mrf.mxu1 }
 0x1d0   : > { %v2580_v28 = vmax.f32 %v2548_v16, 0.0  ;;  %v2546_v31 = vadd.f32 %v4820_v7, %v2507_v40  ;;  %v3302_v35 = vpop.f32.mrf.mxu0  ;;  %v2510_v22 = vmul.f32 %v3318_v58, %v4815_v45 }
 0x1d1   : > { %v2564_v63 = vmax.f32 %v2532_v54, 0.0  ;;  %v2530_v17 = vadd.f32 %v4820_v7, %v2491_v11  ;;  %v2494_v46 = vmul.f32 %v3302_v35, %v4815_v45  ;;  %v2436_v23 = vpop.f32.mrf.mxu1 }
 0x1d2   : > { %v3260_v29 = vpack.c.bf16 %v2580_v28, %v2580_v28  ;;  %v2578_v4 = vmax.f32 %v2546_v31, 0.0  ;;  %v2549_v1 = vadd.f32 %v4820_v7, %v2510_v22  ;;  %v2372_v37 = vpop.f32.mrf.mxu0  ;;  %v2508_v18 = vmul.f32 %v4815_v45, %v2436_v23 }
 0x1d3   : > { %v3244_v21 = vpack.c.bf16 %v2564_v63, %v2564_v63  ;;  %v2562_v27 = vmax.f32 %v2530_v17, 0.0  ;;  %v2533_v24 = vadd.f32 %v4820_v7, %v2494_v46  ;;  %v2492_v6 = vmul.f32 %v4815_v45, %v2372_v37 }
 0x1d4   : > { %2741 = vst.msk [vmem:[%s4834_s15 + $0x58] sm:$0xf] %vm2718_vm12, %v3260_v29  ;;  %v3258_v48 = vpack.c.bf16 %v2578_v4, %v2578_v4  ;;  %v2581_v52 = vmax.f32 %v2549_v1, 0.0  ;;  %v2547_v8 = vadd.f32 %v4820_v7, %v2508_v18 }
 0x1d5   : > { %2725 = vst.msk [vmem:[%s4834_s15 + $0x18] sm:$0xf] %vm2718_vm12, %v3244_v21  ;;  %v3242_v55 = vpack.c.bf16 %v2562_v27, %v2562_v27  ;;  %v2565_v5 = vmax.f32 %v2533_v24, 0.0  ;;  %v2531_v0 = vadd.f32 %v4820_v7, %v2492_v6 }
 0x1d6   : > { %2739 = vst.msk [vmem:[%s4834_s15 + $0x50] sm:$0xf] %vm2718_vm12, %v3258_v48  ;;  %v3261_v15 = vpack.c.bf16 %v2581_v52, %v2581_v52  ;;  %v2579_v25 = vmax.f32 %v2547_v8, 0.0 }
 0x1d7   : > { %2723 = vst.msk [vmem:[%s4834_s15 + $0x10] sm:$0xf] %vm2718_vm12, %v3242_v55  ;;  %v3245_v30 = vpack.c.bf16 %v2565_v5, %v2565_v5  ;;  %v2563_v26 = vmax.f32 %v2531_v0, 0.0 }
 0x1d8   : > { %2742 = vst.msk [vmem:[%s4834_s15 + $0x5c] sm:$0xf] %vm2718_vm12, %v3261_v15  ;;  %v3259_v38 = vpack.c.bf16 %v2579_v25, %v2579_v25 }
 0x1d9   : > { %2726 = vst.msk [vmem:[%s4834_s15 + $0x1c] sm:$0xf] %vm2718_vm12, %v3245_v30  ;;  %v3243_v56 = vpack.c.bf16 %v2563_v26, %v2563_v26 }
 0x1da   : > { %2740 = vst.msk [vmem:[%s4834_s15 + $0x54] sm:$0xf] %vm2718_vm12, %v3259_v38 }
 0x1db   : > { %2724 = vst.msk [vmem:[%s4834_s15 + $0x14] sm:$0xf] %vm2718_vm12, %v3243_v56 }
 0x20b   : > { %v3321_v50 = vpop.f32.mrf.mxu1 }
 0x20c   : > { %v3305_v32 = vpop.f32.mrf.mxu0  ;;  %v2513_v19 = vmul.f32 %v3321_v50, %v4815_v45 }
 0x20d   : > { %v2497_v34 = vmul.f32 %v3305_v32, %v4815_v45  ;;  %v2449_v53 = vpop.f32.mrf.mxu1 }
 0x20e   : > { %v2552_v9 = vadd.f32 %v4820_v7, %v2513_v19  ;;  %v2385_v13 = vpop.f32.mrf.mxu0  ;;  %v2511_v39 = vmul.f32 %v4815_v45, %v2449_v53 }
 0x20f   : > { %v2536_v59 = vadd.f32 %v4820_v7, %v2497_v34  ;;  %v2495_v41 = vmul.f32 %v4815_v45, %v2385_v13  ;;  %v3322_v62 = vpop.f32.mrf.mxu1 }
 0x210   : > { %v2584_v57 = vmax.f32 %v2552_v9, 0.0  ;;  %v2550_v20 = vadd.f32 %v4820_v7, %v2511_v39  ;;  %v3306_v61 = vpop.f32.mrf.mxu0  ;;  %v2514_v3 = vmul.f32 %v3322_v62, %v4815_v45 }
 0x211   : > { %v2568_v33 = vmax.f32 %v2536_v59, 0.0  ;;  %v2534_v49 = vadd.f32 %v4820_v7, %v2495_v41  ;;  %v2498_v42 = vmul.f32 %v3306_v61, %v4815_v45  ;;  %v2452_v12 = vpop.f32.mrf.mxu1 }
 0x212   : > { %v3264_v47 = vpack.c.bf16 %v2584_v57, %v2584_v57  ;;  %v2582_v60 = vmax.f32 %v2550_v20, 0.0  ;;  %v2553_v2 = vadd.f32 %v4820_v7, %v2514_v3  ;;  %v2388_v10 = vpop.f32.mrf.mxu0  ;;  %v2512_v14 = vmul.f32 %v4815_v45, %v2452_v12 }
 0x213   : > { %v3248_v43 = vpack.c.bf16 %v2568_v33, %v2568_v33  ;;  %v2566_v44 = vmax.f32 %v2534_v49, 0.0  ;;  %v2537_v51 = vadd.f32 %v4820_v7, %v2498_v42  ;;  %v2496_v16 = vmul.f32 %v4815_v45, %v2388_v10 }
 0x214   : > { %2745 = vst.msk [vmem:[%s4834_s15 + $0x68] sm:$0xf] %vm2718_vm12, %v3264_v47  ;;  %v3262_v36 = vpack.c.bf16 %v2582_v60, %v2582_v60  ;;  %v2585_v40 = vmax.f32 %v2553_v2, 0.0  ;;  %v2551_v54 = vadd.f32 %v4820_v7, %v2512_v14 }
 0x215   : > { %2729 = vst.msk [vmem:[%s4834_s15 + $0x28] sm:$0xf] %vm2718_vm12, %v3248_v43  ;;  %v3246_v11 = vpack.c.bf16 %v2566_v44, %v2566_v44  ;;  %v2569_v58 = vmax.f32 %v2537_v51, 0.0  ;;  %v2535_v28 = vadd.f32 %v4820_v7, %v2496_v16 }
 0x216   : > { %2743 = vst.msk [vmem:[%s4834_s15 + $0x60] sm:$0xf] %vm2718_vm12, %v3262_v36  ;;  %v3265_v31 = vpack.c.bf16 %v2585_v40, %v2585_v40  ;;  %v2583_v35 = vmax.f32 %v2551_v54, 0.0 }
 0x217   : > { %2727 = vst.msk [vmem:[%s4834_s15 + $0x20] sm:$0xf] %vm2718_vm12, %v3246_v11  ;;  %v3249_v22 = vpack.c.bf16 %v2569_v58, %v2569_v58  ;;  %v2567_v63 = vmax.f32 %v2535_v28, 0.0 }
 0x218   : > { %2746 = vst.msk [vmem:[%s4834_s15 + $0x6c] sm:$0xf] %vm2718_vm12, %v3265_v31  ;;  %v3263_v17 = vpack.c.bf16 %v2583_v35, %v2583_v35 }
 0x219   : > { %2730 = vst.msk [vmem:[%s4834_s15 + $0x2c] sm:$0xf] %vm2718_vm12, %v3249_v22  ;;  %v3247_v46 = vpack.c.bf16 %v2567_v63, %v2567_v63 }
 0x21a   : > { %2744 = vst.msk [vmem:[%s4834_s15 + $0x64] sm:$0xf] %vm2718_vm12, %v3263_v17 }
 0x21b   : > { %2728 = vst.msk [vmem:[%s4834_s15 + $0x24] sm:$0xf] %vm2718_vm12, %v3247_v46 }
 0x247   : > { %v3325_v23 = vpop.f32.mrf.mxu1 }
 0x248   : > { %v3309_v29 = vpop.f32.mrf.mxu0  ;;  %v2517_v4 = vmul.f32 %v3325_v23, %v4815_v45 }
 0x249   : > { %v2501_v1 = vmul.f32 %v3309_v29, %v4815_v45  ;;  %v2465_v37 = vpop.f32.mrf.mxu1 }
 0x24a   : > { %v2556_v18 = vadd.f32 %v4820_v7, %v2517_v4  ;;  %v2401_v21 = vpop.f32.mrf.mxu0  ;;  %v2515_v27 = vmul.f32 %v4815_v45, %v2465_v37 }
 0x24b   : > { %v2540_v24 = vadd.f32 %v4820_v7, %v2501_v1  ;;  %v2499_v6 = vmul.f32 %v4815_v45, %v2401_v21  ;;  %v3326_v48 = vpop.f32.mrf.mxu1 }
 0x24c   : > { %v2588_v52 = vmax.f32 %v2556_v18, 0.0  ;;  %v2554_v8 = vadd.f32 %v4820_v7, %v2515_v27  ;;  %v3310_v55 = vpop.f32.mrf.mxu0  ;;  %v2518_v5 = vmul.f32 %v3326_v48, %v4815_v45 }
 0x24d   : > { %v2572_v0 = vmax.f32 %v2540_v24, 0.0  ;;  %v2538_v15 = vadd.f32 %v4820_v7, %v2499_v6  ;;  %v2502_v25 = vmul.f32 %v3310_v55, %v4815_v45  ;;  %v2468_v30 = vpop.f32.mrf.mxu1 }
 0x24e   : > { %v3268_v26 = vpack.c.bf16 %v2588_v52, %v2588_v52  ;;  %v2586_v38 = vmax.f32 %v2554_v8, 0.0  ;;  %v2557_v56 = vadd.f32 %v4820_v7, %v2518_v5  ;;  %v2404_v50 = vpop.f32.mrf.mxu0  ;;  %v2516_v32 = vmul.f32 %v4815_v45, %v2468_v30 }
 0x24f   : > { %v3252_v19 = vpack.c.bf16 %v2572_v0, %v2572_v0  ;;  %v2570_v34 = vmax.f32 %v2538_v15, 0.0  ;;  %v2541_v53 = vadd.f32 %v4820_v7, %v2502_v25  ;;  %v2500_v9 = vmul.f32 %v4815_v45, %v2404_v50 }
 0x250   : > { %2749 = vst.msk [vmem:[%s4834_s15 + $0x78] sm:$0xf] %vm2718_vm12, %v3268_v26  ;;  %v3266_v13 = vpack.c.bf16 %v2586_v38, %v2586_v38  ;;  %v2589_v39 = vmax.f32 %v2557_v56, 0.0  ;;  %v2555_v59 = vadd.f32 %v4820_v7, %v2516_v32 }
 0x251   : > { %2733 = vst.msk [vmem:[%s4834_s15 + $0x38] sm:$0xf] %vm2718_vm12, %v3252_v19  ;;  %v3250_v41 = vpack.c.bf16 %v2570_v34, %v2570_v34  ;;  %v2573_v62 = vmax.f32 %v2541_v53, 0.0  ;;  %v2539_v57 = vadd.f32 %v4820_v7, %v2500_v9 }
 0x252   : > { %2747 = vst.msk [vmem:[%s4834_s15 + $0x70] sm:$0xf] %vm2718_vm12, %v3266_v13  ;;  %v3269_v20 = vpack.c.bf16 %v2589_v39, %v2589_v39  ;;  %v2587_v61 = vmax.f32 %v2555_v59, 0.0 }
 0x253   : > { %2731 = vst.msk [vmem:[%s4834_s15 + $0x30] sm:$0xf] %vm2718_vm12, %v3250_v41  ;;  %v3253_v45 = vpack.c.bf16 %v2573_v62, %v2573_v62  ;;  %v2571_v3 = vmax.f32 %v2539_v57, 0.0 }
 0x254   : > { %2750 = vst.msk [vmem:[%s4834_s15 + $0x7c] sm:$0xf] %vm2718_vm12, %v3269_v20  ;;  %v3267_v33 = vpack.c.bf16 %v2587_v61, %v2587_v61 }
 0x255   : > { %2734 = vst.msk [vmem:[%s4834_s15 + $0x3c] sm:$0xf] %vm2718_vm12, %v3253_v45  ;;  %v3251_v49 = vpack.c.bf16 %v2571_v3, %v2571_v3 }
 0x256   : > { %2748 = vst.msk [vmem:[%s4834_s15 + $0x74] sm:$0xf] %vm2718_vm12, %v3267_v33 }
 0x257   : > { %2732 = vst.msk [vmem:[%s4834_s15 + $0x34] sm:$0xf] %vm2718_vm12, %v3251_v49 }
 0x258 PF: > { %s14_s17 = sadd.s32 1, %s3537_s17   ;;  %s4985_s15 = smov %s3533_s16 }
 0x259   : > { %p11_p5 = scmp.ge.s32.totalorder %s14_s17, 4   ;;  %s4986_s16 = smov %s4988_s18 }
 0x25b   :  { %13 = sbr.rel (!%p11_p5) target bundleno = 2 (0x2), region = 77 }

</bundles_post_ra>
